<compile_context>
chip_gen: v7x
topology: tpu7x:2x2x1
jax: 0.10.0
libtpu: 0.0.40
codegen_flags: <defaults>
</compile_context>

<pallas_src>
import functools

import jax
import jax.numpy as jnp
from jax import lax
from jax.experimental import pallas as pl
from jax.experimental.pallas import tpu as pltpu


def _dw_sep_kernel(xt_ref, xc_ref, xb_ref, wc_ref, o_ref, xwin_ref):
    # xt_ref  : (1, 1,  W, Cin)   original row h*TH - 1 (clamped; zeroed at h == 0)
    # xc_ref  : (1, TH, W, Cin)   original rows [h*TH, (h+1)*TH)
    # xb_ref  : (1, 1,  W, Cin)   original row (h+1)*TH (clamped; zeroed at h == last)
    # wc_ref  : (9, Cin, Cout)    fused depthwise*pointwise weights (f32)
    # o_ref   : (1, TH, W, Cout)
    # xwin_ref: (TH+2, W+2, Cin)  VMEM scratch: zero-bordered input window
    TH, W, Cout = o_ref.shape[1], o_ref.shape[2], o_ref.shape[3]
    Cin = xc_ref.shape[3]
    h = pl.program_id(1)
    last_h = pl.num_programs(1) - 1
    dt = xwin_ref.dtype

    # Left/right zero-padding columns (image edge); scratch is otherwise stale.
    col_zeros = jnp.zeros((TH + 2, 1, Cin), dt)
    xwin_ref[:, 0:1, :] = col_zeros
    xwin_ref[:, W + 1:W + 2, :] = col_zeros
    # Body rows.
    xwin_ref[1:TH + 1, 1:W + 1, :] = xc_ref[0]
    # Top / bottom halo rows (zero at the top/bottom image edges).
    row_zeros = jnp.zeros((1, W + 2, Cin), dt)

    @pl.when(h > 0)
    def _():
        xwin_ref[0:1, 1:W + 1, :] = xt_ref[0]

    @pl.when(h == 0)
    def _():
        xwin_ref[0:1, :, :] = row_zeros

    @pl.when(h < last_h)
    def _():
        xwin_ref[TH + 1:TH + 2, 1:W + 1, :] = xb_ref[0]

    @pl.when(h == last_h)
    def _():
        xwin_ref[TH + 1:TH + 2, :, :] = row_zeros

    # Depthwise 3x3 + pointwise 1x1 fused into 9 accumulated MXU matmuls:
    # out[p, co] = sum_t sum_ci tap_t[p, ci] * wc[t, ci, co].
    acc = jnp.zeros((TH * W, Cout), jnp.float32)
    for di in range(3):
        for dj in range(3):
            t = 3 * di + dj
            tap = xwin_ref[di:di + TH, dj:dj + W, :].astype(jnp.float32)
            acc = acc + jnp.dot(tap.reshape(TH * W, Cin), wc_ref[t],
                                preferred_element_type=jnp.float32)
    o_ref[0] = acc.reshape(TH, W, Cout).astype(o_ref.dtype)


def _pick_row_tile(H, W, Cin, Cout, itemsize, vmem_budget=8 * 1024 * 1024):
    """Largest row tile TH that divides H and fits the per-step VMEM budget."""
    best = 1
    for th in range(1, H + 1):
        if H % th:
            continue
        est = (2 * th * W * Cin * itemsize            # double-buffered body rows
               + 2 * th * W * Cout * itemsize         # double-buffered output
               + (th + 2) * (W + 2) * Cin * itemsize  # padded-window scratch
               + th * W * (Cin + Cout) * 4            # f32 tap + accumulator temps
               + 4 * (W + 2) * Cin * itemsize)        # halo rows
        if est <= vmem_budget:
            best = th
    return best


def depthwise_separable_nhwc(x_nhwc, wc, *, row_tile=None):
    """Fused depthwise(3x3, pad=1, groups=Cin) + pointwise(1x1) conv, NHWC in/out.

    x_nhwc: (N, H, W, Cin); wc: (9, Cin, Cout), wc[3*di+dj, ci, co] = dw[ci,di,dj]*pw[co,ci].
    """
    N, H, W, Cin = x_nhwc.shape
    Cout = wc.shape[-1]

    if row_tile is None:
        row_tile = _pick_row_tile(H, W, Cin, Cout, x_nhwc.dtype.itemsize)
    TH = int(row_tile)
    if H % TH != 0:
        raise ValueError(f"row_tile={TH} must divide H={H}")
    HT = H // TH

    grid_spec = pltpu.PrefetchScalarGridSpec(
        num_scalar_prefetch=0,
        grid=(N, HT),
        in_specs=[
            # Top halo row: original row h*TH - 1 (clamped; masked in-kernel at h == 0).
            pl.BlockSpec((1, 1, W, Cin),
                         lambda n, h: (n, jnp.maximum(h * TH - 1, 0), 0, 0)),
            # Body rows [h*TH, (h+1)*TH).
            pl.BlockSpec((1, TH, W, Cin), lambda n, h: (n, h, 0, 0)),
            # Bottom halo row: original row (h+1)*TH (clamped; masked at h == last).
            pl.BlockSpec((1, 1, W, Cin),
                         lambda n, h: (n, jnp.minimum((h + 1) * TH, H - 1), 0, 0)),
            # Fused weights: constant index_map -> VMEM-resident across the grid.
            pl.BlockSpec((9, Cin, Cout), lambda n, h: (0, 0, 0)),
        ],
        out_specs=pl.BlockSpec((1, TH, W, Cout), lambda n, h: (n, h, 0, 0)),
        scratch_shapes=[pltpu.VMEM((TH + 2, W + 2, Cin), x_nhwc.dtype)],
    )

    return pl.pallas_call(
        _dw_sep_kernel,
        out_shape=jax.ShapeDtypeStruct((N, H, W, Cout), x_nhwc.dtype),
        grid_spec=grid_spec,
        compiler_params=pltpu.CompilerParams(
            dimension_semantics=("parallel", "parallel"),
            vmem_limit_bytes=32 * 1024 * 1024),
    )(x_nhwc, x_nhwc, x_nhwc, wc)


@functools.partial(jax.jit, static_argnames=("row_tile",))
def depthwise_separable(x_nchw, dw_weight, pw_weight, *, row_tile=None):
    """PyTorch-style entry: x (N,Cin,H,W), dw (Cin,1,3,3), pw (Cout,Cin,1,1) -> (N,Cout,H,W)."""
    N, Cin, H, W = x_nchw.shape
    Cout = pw_weight.shape[0]

    # NCHW -> NHWC once so channels sit on the 128-lane axis inside the kernel.
    # TODO(synk): if the surrounding model keeps activations in NHWC, call
    # depthwise_separable_nhwc directly and skip these two HBM transpose passes.
    x_nhwc = jnp.transpose(x_nchw, (0, 2, 3, 1))

    # Precombine depthwise and pointwise weights (done once, outside the grid):
    # wc[3*di+dj, ci, co] = dw_weight[ci, 0, di, dj] * pw_weight[co, ci, 0, 0].
    dw = jnp.transpose(dw_weight[:, 0, :, :], (1, 2, 0)).reshape(9, Cin)
    pw = jnp.transpose(pw_weight[:, :, 0, 0], (1, 0))
    wc = (dw[:, :, None] * pw[None, :, :]).astype(jnp.float32)

    out_nhwc = depthwise_separable_nhwc(x_nhwc, wc, row_tile=row_tile)
    return jnp.transpose(out_nhwc, (0, 3, 1, 2))


def _reference(x_nchw, dw_weight, pw_weight):
    # Pure-JAX reference using lax.conv (NCHW, like PyTorch; both convs bias-free).
    Cin = x_nchw.shape[1]
    dw_out = lax.conv_general_dilated(
        x_nchw, dw_weight, window_strides=(1, 1), padding=((1, 1), (1, 1)),
        dimension_numbers=("NCHW", "OIHW", "NCHW"), feature_group_count=Cin,
        precision=lax.Precision.HIGHEST)
    return lax.conv_general_dilated(
        dw_out, pw_weight, window_strides=(1, 1), padding=((0, 0), (0, 0)),
        dimension_numbers=("NCHW", "OIHW", "NCHW"),
        precision=lax.Precision.HIGHEST)


if __name__ == "__main__":
    key = jax.random.PRNGKey(0)
    kx, kdw, kpw = jax.random.split(key, 3)

    N, Cin, Cout, H, W = 2, 4, 8, 16, 16
    x = jax.random.normal(kx, (N, Cin, H, W), dtype=jnp.float32)
    # PyTorch nn.Conv2d weight shapes (bias=False in the module).
    dw_weight = jax.random.normal(kdw, (Cin, 1, 3, 3), dtype=jnp.float32) * 0.1
    pw_weight = jax.random.normal(kpw, (Cout, Cin, 1, 1), dtype=jnp.float32) * 0.1

    ref = jax.block_until_ready(_reference(x, dw_weight, pw_weight))

    # Auto tile (tiny problem -> whole image per batch element, one grid step each).
    out = jax.block_until_ready(depthwise_separable(x, dw_weight, pw_weight))
    assert out.shape == (N, Cout, H, W)
    assert jnp.allclose(out, ref, atol=2e-4, rtol=2e-4)

    # Explicitly exercise the row-tiled halo path (2 row tiles per image).
    out_tiled = jax.block_until_ready(
        depthwise_separable(x, dw_weight, pw_weight, row_tile=8))
    assert jnp.allclose(out_tiled, ref, atol=2e-4, rtol=2e-4)

    print("KERNEL_OK")
</pallas_src>

<mosaic_0001>
module attributes {stable_mosaic.version = 11 : i64} {
  func.func @_dw_sep_kernel(%arg0: i32, %arg1: i32, %arg2: memref<1x1x16x4xf32, #tpu.memory_space<vmem>>, %arg3: memref<1x16x16x4xf32, #tpu.memory_space<vmem>>, %arg4: memref<1x1x16x4xf32, #tpu.memory_space<vmem>>, %arg5: memref<9x4x8xf32, #tpu.memory_space<vmem>>, %arg6: memref<1x16x16x8xf32, #tpu.memory_space<vmem>>, %arg7: memref<18x18x4xf32, #tpu.memory_space<vmem>>) attributes {dimension_semantics = [#tpu.dimension_semantics<parallel>, #tpu.dimension_semantics<parallel>], iteration_bounds = array<i64: 2, 1>, scalar_prefetch = 0 : i64, scratch_operands = 1 : i64, tpu.core_type = #tpu.core_type<tc>, window_params = [{transform_indices = @transform_0, window_bounds = array<i64: 1, 1, 16, 4>}, {transform_indices = @transform_1, window_bounds = array<i64: 1, 16, 16, 4>}, {transform_indices = @transform_2, window_bounds = array<i64: 1, 1, 16, 4>}, {pipeline_mode = #tpu.pipeline_mode<synchronous>, transform_indices = @transform_3, window_bounds = array<i64: 9, 4, 8>}, {transform_indices = @transform_4, window_bounds = array<i64: 1, 16, 16, 8>}]} {
    %cst = arith.constant 0.000000e+00 : f32
    %0 = vector.broadcast %cst : f32 to vector<18x1x4xf32>
    %c0 = arith.constant 0 : index
    %c0_0 = arith.constant 0 : index
    %c0_1 = arith.constant 0 : index
    %1 = vector.load %arg7[%c0, %c0_0, %c0_1] : memref<18x18x4xf32, #tpu.memory_space<vmem>>, vector<18x1x4xf32>
    tpu.vector_store %arg7[%c0, %c0_0, %c0_1], %0 {strides = array<i32>} : memref<18x18x4xf32, #tpu.memory_space<vmem>>, vector<18x1x4xf32>,
    %c0_2 = arith.constant 0 : index
    %c17 = arith.constant 17 : index
    %c0_3 = arith.constant 0 : index
    %2 = vector.load %arg7[%c0_2, %c17, %c0_3] : memref<18x18x4xf32, #tpu.memory_space<vmem>>, vector<18x1x4xf32>
    tpu.vector_store %arg7[%c0_2, %c17, %c0_3], %0 {strides = array<i32>} : memref<18x18x4xf32, #tpu.memory_space<vmem>>, vector<18x1x4xf32>,
    %c0_4 = arith.constant 0 : index
    %c0_5 = arith.constant 0 : index
    %c0_6 = arith.constant 0 : index
    %c0_7 = arith.constant 0 : index
    %3 = vector.load %arg3[%c0_4, %c0_5, %c0_6, %c0_7] : memref<1x16x16x4xf32, #tpu.memory_space<vmem>>, vector<1x16x16x4xf32>
    %4 = vector.shape_cast %3 : vector<1x16x16x4xf32> to vector<16x16x4xf32>
    %c1 = arith.constant 1 : index
    %c1_8 = arith.constant 1 : index
    %c0_9 = arith.constant 0 : index
    %5 = vector.load %arg7[%c1, %c1_8, %c0_9] : memref<18x18x4xf32, #tpu.memory_space<vmem>>, vector<16x16x4xf32>
    tpu.vector_store %arg7[%c1, %c1_8, %c0_9], %4 {strides = array<i32>} : memref<18x18x4xf32, #tpu.memory_space<vmem>>, vector<16x16x4xf32>,
    %cst_10 = arith.constant 0.000000e+00 : f32
    %6 = vector.broadcast %cst_10 : f32 to vector<1x18x4xf32>
    %c0_i32 = arith.constant 0 : i32
    %7 = arith.cmpi sgt, %arg1, %c0_i32 : i32
    %8 = arith.extui %7 : i1 to i32
    %c0_i32_11 = arith.constant 0 : i32
    %9 = arith.cmpi ne, %8, %c0_i32_11 : i32
    scf.if %9 {
      %c0_79 = arith.constant 0 : index
      %c0_80 = arith.constant 0 : index
      %c0_81 = arith.constant 0 : index
      %c0_82 = arith.constant 0 : index
      %78 = vector.load %arg2[%c0_79, %c0_80, %c0_81, %c0_82] : memref<1x1x16x4xf32, #tpu.memory_space<vmem>>, vector<1x1x16x4xf32>
      %79 = vector.shape_cast %78 : vector<1x1x16x4xf32> to vector<1x16x4xf32>
      %c0_83 = arith.constant 0 : index
      %c1_84 = arith.constant 1 : index
      %c0_85 = arith.constant 0 : index
      %80 = vector.load %arg7[%c0_83, %c1_84, %c0_85] : memref<18x18x4xf32, #tpu.memory_space<vmem>>, vector<1x16x4xf32>
      tpu.vector_store %arg7[%c0_83, %c1_84, %c0_85], %79 {strides = array<i32>} : memref<18x18x4xf32, #tpu.memory_space<vmem>>, vector<1x16x4xf32>,
    } else {
    }
    %c0_i32_12 = arith.constant 0 : i32
    %10 = arith.cmpi eq, %arg1, %c0_i32_12 : i32
    %11 = arith.extui %10 : i1 to i32
    %c0_i32_13 = arith.constant 0 : i32
    %12 = arith.cmpi ne, %11, %c0_i32_13 : i32
    scf.if %12 {
      %c0_79 = arith.constant 0 : index
      %c0_80 = arith.constant 0 : index
      %c0_81 = arith.constant 0 : index
      %78 = vector.load %arg7[%c0_79, %c0_80, %c0_81] : memref<18x18x4xf32, #tpu.memory_space<vmem>>, vector<1x18x4xf32>
      tpu.vector_store %arg7[%c0_79, %c0_80, %c0_81], %6 {strides = array<i32>} : memref<18x18x4xf32, #tpu.memory_space<vmem>>, vector<1x18x4xf32>,
    } else {
    }
    %c0_i32_14 = arith.constant 0 : i32
    %13 = arith.cmpi slt, %arg1, %c0_i32_14 : i32
    %14 = arith.extui %13 : i1 to i32
    %c0_i32_15 = arith.constant 0 : i32
    %15 = arith.cmpi ne, %14, %c0_i32_15 : i32
    scf.if %15 {
      %c0_79 = arith.constant 0 : index
      %c0_80 = arith.constant 0 : index
      %c0_81 = arith.constant 0 : index
      %c0_82 = arith.constant 0 : index
      %78 = vector.load %arg4[%c0_79, %c0_80, %c0_81, %c0_82] : memref<1x1x16x4xf32, #tpu.memory_space<vmem>>, vector<1x1x16x4xf32>
      %79 = vector.shape_cast %78 : vector<1x1x16x4xf32> to vector<1x16x4xf32>
      %c17_83 = arith.constant 17 : index
      %c1_84 = arith.constant 1 : index
      %c0_85 = arith.constant 0 : index
      %80 = vector.load %arg7[%c17_83, %c1_84, %c0_85] : memref<18x18x4xf32, #tpu.memory_space<vmem>>, vector<1x16x4xf32>
      tpu.vector_store %arg7[%c17_83, %c1_84, %c0_85], %79 {strides = array<i32>} : memref<18x18x4xf32, #tpu.memory_space<vmem>>, vector<1x16x4xf32>,
    } else {
    }
    %c0_i32_16 = arith.constant 0 : i32
    %16 = arith.cmpi eq, %arg1, %c0_i32_16 : i32
    %17 = arith.extui %16 : i1 to i32
    %c0_i32_17 = arith.constant 0 : i32
    %18 = arith.cmpi ne, %17, %c0_i32_17 : i32
    scf.if %18 {
      %c17_79 = arith.constant 17 : index
      %c0_80 = arith.constant 0 : index
      %c0_81 = arith.constant 0 : index
      %78 = vector.load %arg7[%c17_79, %c0_80, %c0_81] : memref<18x18x4xf32, #tpu.memory_space<vmem>>, vector<1x18x4xf32>
      tpu.vector_store %arg7[%c17_79, %c0_80, %c0_81], %6 {strides = array<i32>} : memref<18x18x4xf32, #tpu.memory_space<vmem>>, vector<1x18x4xf32>,
    } else {
    }
    %cst_18 = arith.constant 0.000000e+00 : f32
    %19 = vector.broadcast %cst_18 : f32 to vector<256x8xf32>
    %c0_19 = arith.constant 0 : index
    %c0_20 = arith.constant 0 : index
    %c0_21 = arith.constant 0 : index
    %20 = vector.load %arg7[%c0_19, %c0_20, %c0_21] : memref<18x18x4xf32, #tpu.memory_space<vmem>>, vector<16x16x4xf32>
    %21 = vector.shape_cast %20 : vector<16x16x4xf32> to vector<256x4xf32>
    %c0_22 = arith.constant 0 : index
    %c0_23 = arith.constant 0 : index
    %c0_24 = arith.constant 0 : index
    %22 = vector.load %arg5[%c0_22, %c0_23, %c0_24] : memref<9x4x8xf32, #tpu.memory_space<vmem>>, vector<1x4x8xf32>
    %23 = vector.shape_cast %22 : vector<1x4x8xf32> to vector<4x8xf32>
    %cst_25 = arith.constant dense<0.000000e+00> : vector<256x8xf32>
    %24 = tpu.matmul %21, %23, %cst_25 {dimension_numbers = #tpu.dot_dimension_numbers<[1], [0], [0], [1], [0, 0, 1, 1], [], []>} : vector<256x4xf32>, vector<4x8xf32>, vector<256x8xf32> -> vector<256x8xf32>
    %25 = arith.addf %19, %24 : vector<256x8xf32>
    %c0_26 = arith.constant 0 : index
    %c1_27 = arith.constant 1 : index
    %c0_28 = arith.constant 0 : index
    %26 = vector.load %arg7[%c0_26, %c1_27, %c0_28] : memref<18x18x4xf32, #tpu.memory_space<vmem>>, vector<16x16x4xf32>
    %27 = vector.shape_cast %26 : vector<16x16x4xf32> to vector<256x4xf32>
    %c1_29 = arith.constant 1 : index
    %c0_30 = arith.constant 0 : index
    %c0_31 = arith.constant 0 : index
    %28 = vector.load %arg5[%c1_29, %c0_30, %c0_31] : memref<9x4x8xf32, #tpu.memory_space<vmem>>, vector<1x4x8xf32>
    %29 = vector.shape_cast %28 : vector<1x4x8xf32> to vector<4x8xf32>
    %cst_32 = arith.constant dense<0.000000e+00> : vector<256x8xf32>
    %30 = tpu.matmul %27, %29, %cst_32 {dimension_numbers = #tpu.dot_dimension_numbers<[1], [0], [0], [1], [0, 0, 1, 1], [], []>} : vector<256x4xf32>, vector<4x8xf32>, vector<256x8xf32> -> vector<256x8xf32>
    %31 = arith.addf %25, %30 : vector<256x8xf32>
    %c0_33 = arith.constant 0 : index
    %c2 = arith.constant 2 : index
    %c0_34 = arith.constant 0 : index
    %32 = vector.load %arg7[%c0_33, %c2, %c0_34] : memref<18x18x4xf32, #tpu.memory_space<vmem>>, vector<16x16x4xf32>
    %33 = vector.shape_cast %32 : vector<16x16x4xf32> to vector<256x4xf32>
    %c2_35 = arith.constant 2 : index
    %c0_36 = arith.constant 0 : index
    %c0_37 = arith.constant 0 : index
    %34 = vector.load %arg5[%c2_35, %c0_36, %c0_37] : memref<9x4x8xf32, #tpu.memory_space<vmem>>, vector<1x4x8xf32>
    %35 = vector.shape_cast %34 : vector<1x4x8xf32> to vector<4x8xf32>
    %cst_38 = arith.constant dense<0.000000e+00> : vector<256x8xf32>
    %36 = tpu.matmul %33, %35, %cst_38 {dimension_numbers = #tpu.dot_dimension_numbers<[1], [0], [0], [1], [0, 0, 1, 1], [], []>} : vector<256x4xf32>, vector<4x8xf32>, vector<256x8xf32> -> vector<256x8xf32>
    %37 = arith.addf %31, %36 : vector<256x8xf32>
    %c1_39 = arith.constant 1 : index
    %c0_40 = arith.constant 0 : index
    %c0_41 = arith.constant 0 : index
    %38 = vector.load %arg7[%c1_39, %c0_40, %c0_41] : memref<18x18x4xf32, #tpu.memory_space<vmem>>, vector<16x16x4xf32>
    %39 = vector.shape_cast %38 : vector<16x16x4xf32> to vector<256x4xf32>
    %c3 = arith.constant 3 : index
    %c0_42 = arith.constant 0 : index
    %c0_43 = arith.constant 0 : index
    %40 = vector.load %arg5[%c3, %c0_42, %c0_43] : memref<9x4x8xf32, #tpu.memory_space<vmem>>, vector<1x4x8xf32>
    %41 = vector.shape_cast %40 : vector<1x4x8xf32> to vector<4x8xf32>
    %cst_44 = arith.constant dense<0.000000e+00> : vector<256x8xf32>
    %42 = tpu.matmul %39, %41, %cst_44 {dimension_numbers = #tpu.dot_dimension_numbers<[1], [0], [0], [1], [0, 0, 1, 1], [], []>} : vector<256x4xf32>, vector<4x8xf32>, vector<256x8xf32> -> vector<256x8xf32>
    %43 = arith.addf %37, %42 : vector<256x8xf32>
    %c1_45 = arith.constant 1 : index
    %c1_46 = arith.constant 1 : index
    %c0_47 = arith.constant 0 : index
    %44 = vector.load %arg7[%c1_45, %c1_46, %c0_47] : memref<18x18x4xf32, #tpu.memory_space<vmem>>, vector<16x16x4xf32>
    %45 = vector.shape_cast %44 : vector<16x16x4xf32> to vector<256x4xf32>
    %c4 = arith.constant 4 : index
    %c0_48 = arith.constant 0 : index
    %c0_49 = arith.constant 0 : index
    %46 = vector.load %arg5[%c4, %c0_48, %c0_49] : memref<9x4x8xf32, #tpu.memory_space<vmem>>, vector<1x4x8xf32>
    %47 = vector.shape_cast %46 : vector<1x4x8xf32> to vector<4x8xf32>
    %cst_50 = arith.constant dense<0.000000e+00> : vector<256x8xf32>
    %48 = tpu.matmul %45, %47, %cst_50 {dimension_numbers = #tpu.dot_dimension_numbers<[1], [0], [0], [1], [0, 0, 1, 1], [], []>} : vector<256x4xf32>, vector<4x8xf32>, vector<256x8xf32> -> vector<256x8xf32>
    %49 = arith.addf %43, %48 : vector<256x8xf32>
    %c1_51 = arith.constant 1 : index
    %c2_52 = arith.constant 2 : index
    %c0_53 = arith.constant 0 : index
    %50 = vector.load %arg7[%c1_51, %c2_52, %c0_53] : memref<18x18x4xf32, #tpu.memory_space<vmem>>, vector<16x16x4xf32>
    %51 = vector.shape_cast %50 : vector<16x16x4xf32> to vector<256x4xf32>
    %c5 = arith.constant 5 : index
    %c0_54 = arith.constant 0 : index
    %c0_55 = arith.constant 0 : index
    %52 = vector.load %arg5[%c5, %c0_54, %c0_55] : memref<9x4x8xf32, #tpu.memory_space<vmem>>, vector<1x4x8xf32>
    %53 = vector.shape_cast %52 : vector<1x4x8xf32> to vector<4x8xf32>
    %cst_56 = arith.constant dense<0.000000e+00> : vector<256x8xf32>
    %54 = tpu.matmul %51, %53, %cst_56 {dimension_numbers = #tpu.dot_dimension_numbers<[1], [0], [0], [1], [0, 0, 1, 1], [], []>} : vector<256x4xf32>, vector<4x8xf32>, vector<256x8xf32> -> vector<256x8xf32>
    %55 = arith.addf %49, %54 : vector<256x8xf32>
    %c2_57 = arith.constant 2 : index
    %c0_58 = arith.constant 0 : index
    %c0_59 = arith.constant 0 : index
    %56 = vector.load %arg7[%c2_57, %c0_58, %c0_59] : memref<18x18x4xf32, #tpu.memory_space<vmem>>, vector<16x16x4xf32>
    %57 = vector.shape_cast %56 : vector<16x16x4xf32> to vector<256x4xf32>
    %c6 = arith.constant 6 : index
    %c0_60 = arith.constant 0 : index
    %c0_61 = arith.constant 0 : index
    %58 = vector.load %arg5[%c6, %c0_60, %c0_61] : memref<9x4x8xf32, #tpu.memory_space<vmem>>, vector<1x4x8xf32>
    %59 = vector.shape_cast %58 : vector<1x4x8xf32> to vector<4x8xf32>
    %cst_62 = arith.constant dense<0.000000e+00> : vector<256x8xf32>
    %60 = tpu.matmul %57, %59, %cst_62 {dimension_numbers = #tpu.dot_dimension_numbers<[1], [0], [0], [1], [0, 0, 1, 1], [], []>} : vector<256x4xf32>, vector<4x8xf32>, vector<256x8xf32> -> vector<256x8xf32>
    %61 = arith.addf %55, %60 : vector<256x8xf32>
    %c2_63 = arith.constant 2 : index
    %c1_64 = arith.constant 1 : index
    %c0_65 = arith.constant 0 : index
    %62 = vector.load %arg7[%c2_63, %c1_64, %c0_65] : memref<18x18x4xf32, #tpu.memory_space<vmem>>, vector<16x16x4xf32>
    %63 = vector.shape_cast %62 : vector<16x16x4xf32> to vector<256x4xf32>
    %c7 = arith.constant 7 : index
    %c0_66 = arith.constant 0 : index
    %c0_67 = arith.constant 0 : index
    %64 = vector.load %arg5[%c7, %c0_66, %c0_67] : memref<9x4x8xf32, #tpu.memory_space<vmem>>, vector<1x4x8xf32>
    %65 = vector.shape_cast %64 : vector<1x4x8xf32> to vector<4x8xf32>
    %cst_68 = arith.constant dense<0.000000e+00> : vector<256x8xf32>
    %66 = tpu.matmul %63, %65, %cst_68 {dimension_numbers = #tpu.dot_dimension_numbers<[1], [0], [0], [1], [0, 0, 1, 1], [], []>} : vector<256x4xf32>, vector<4x8xf32>, vector<256x8xf32> -> vector<256x8xf32>
    %67 = arith.addf %61, %66 : vector<256x8xf32>
    %c2_69 = arith.constant 2 : index
    %c2_70 = arith.constant 2 : index
    %c0_71 = arith.constant 0 : index
    %68 = vector.load %arg7[%c2_69, %c2_70, %c0_71] : memref<18x18x4xf32, #tpu.memory_space<vmem>>, vector<16x16x4xf32>
    %69 = vector.shape_cast %68 : vector<16x16x4xf32> to vector<256x4xf32>
    %c8 = arith.constant 8 : index
    %c0_72 = arith.constant 0 : index
    %c0_73 = arith.constant 0 : index
    %70 = vector.load %arg5[%c8, %c0_72, %c0_73] : memref<9x4x8xf32, #tpu.memory_space<vmem>>, vector<1x4x8xf32>
    %71 = vector.shape_cast %70 : vector<1x4x8xf32> to vector<4x8xf32>
    %cst_74 = arith.constant dense<0.000000e+00> : vector<256x8xf32>
    %72 = tpu.matmul %69, %71, %cst_74 {dimension_numbers = #tpu.dot_dimension_numbers<[1], [0], [0], [1], [0, 0, 1, 1], [], []>} : vector<256x4xf32>, vector<4x8xf32>, vector<256x8xf32> -> vector<256x8xf32>
    %73 = arith.addf %67, %72 : vector<256x8xf32>
    %74 = vector.shape_cast %73 : vector<256x8xf32> to vector<16x16x8xf32>
    %c0_75 = arith.constant 0 : index
    %c0_76 = arith.constant 0 : index
    %c0_77 = arith.constant 0 : index
    %c0_78 = arith.constant 0 : index
    %75 = vector.load %arg6[%c0_75, %c0_76, %c0_77, %c0_78] : memref<1x16x16x8xf32, #tpu.memory_space<vmem>>, vector<1x16x16x8xf32>
    %76 = vector.shape_cast %75 : vector<1x16x16x8xf32> to vector<16x16x8xf32>
    %77 = vector.shape_cast %74 : vector<16x16x8xf32> to vector<1x16x16x8xf32>
    tpu.vector_store %arg6[%c0_75, %c0_76, %c0_77, %c0_78], %77 {strides = array<i32>} : memref<1x16x16x8xf32, #tpu.memory_space<vmem>>, vector<1x16x16x8xf32>,
    return
  }
  func.func @transform_0(%arg0: i32, %arg1: i32) -> (i32, i32, i32, i32) {
    %c16_i32 = arith.constant 16 : i32
    %0 = arith.muli %arg1, %c16_i32 : i32
    %c1_i32 = arith.constant 1 : i32
    %1 = arith.subi %0, %c1_i32 : i32
    %c0_i32 = arith.constant 0 : i32
    %2 = arith.maxsi %1, %c0_i32 : i32
    %c0_i32_0 = arith.constant 0 : i32
    %c0_i32_1 = arith.constant 0 : i32
    %c0_i32_2 = arith.constant 0 : i32
    return %arg0, %2, %c0_i32_0, %c0_i32_1 : i32, i32, i32, i32
  }
  func.func @transform_1(%arg0: i32, %arg1: i32) -> (i32, i32, i32, i32) {
    %c0_i32 = arith.constant 0 : i32
    %c0_i32_0 = arith.constant 0 : i32
    %c0_i32_1 = arith.constant 0 : i32
    return %arg0, %arg1, %c0_i32, %c0_i32_0 : i32, i32, i32, i32
  }
  func.func @transform_2(%arg0: i32, %arg1: i32) -> (i32, i32, i32, i32) {
    %c1_i32 = arith.constant 1 : i32
    %0 = arith.addi %arg1, %c1_i32 : i32
    %c16_i32 = arith.constant 16 : i32
    %1 = arith.muli %0, %c16_i32 : i32
    %c15_i32 = arith.constant 15 : i32
    %2 = arith.minsi %1, %c15_i32 : i32
    %c0_i32 = arith.constant 0 : i32
    %c0_i32_0 = arith.constant 0 : i32
    %c0_i32_1 = arith.constant 0 : i32
    return %arg0, %2, %c0_i32, %c0_i32_0 : i32, i32, i32, i32
  }
  func.func @transform_3(%arg0: i32, %arg1: i32) -> (i32, i32, i32) {
    %c0_i32 = arith.constant 0 : i32
    %c0_i32_0 = arith.constant 0 : i32
    %c0_i32_1 = arith.constant 0 : i32
    %c0_i32_2 = arith.constant 0 : i32
    return %c0_i32, %c0_i32_0, %c0_i32_1 : i32, i32, i32
  }
  func.func @transform_4(%arg0: i32, %arg1: i32) -> (i32, i32, i32, i32) {
    %c0_i32 = arith.constant 0 : i32
    %c0_i32_0 = arith.constant 0 : i32
    %c0_i32_1 = arith.constant 0 : i32
    return %arg0, %arg1, %c0_i32, %c0_i32_0 : i32, i32, i32, i32
  }
}

</mosaic_0001>

<bundles_post_ra>
// kernel: mul.8
= control target key start
LH: loop header
LB: loop body
LE: loop exit
PB: predicated region body
PF: predicated region fallthrough
CT: control target
= control target key end

     0   :  { %vm21_vm0 = vcmask 23552   ;;  %s49_s14 = smov 3   ;;  %vm27_vm1 = vcmask 72752   ;;  %vm33_vm2 = vcmask 48152   ;;  %s75_s0 = inlined_call_operand.vmem [shape: f32[3,3,4], index: 0, kind: input, shape index: {}]   ;;  %s76_s1 = inlined_call_operand.vmem [shape: f32[9,4], index: 1, kind: output, shape index: {}]  }
   0x1   :  { %v43_v0 = vld [vmem:[%s75_s0 + $0xc] sm:$0xf]  ;;  %v44_v1 = vld [vmem:[%s75_s0 + $0x8] sm:$0xf]  ;;  %v45_v2 = vld [vmem:[%s75_s0 + $0x4] sm:$0xf] }
   0x2   :  { %8 = vst [vmem:[#allocation1 + $0x18] sm:$0xf] %v43_v0  ;;  %13 = vst [vmem:[#allocation1 + $0x10] sm:$0xf] %v44_v1  ;;  %v18_v3 = vld [vmem:[%s75_s0] sm:$0xf] }
   0x3   :  { %17 = vst [vmem:[#allocation1 + $0x8] sm:$0xf] %v45_v2  ;;  %19 = vst [vmem:[#allocation1] sm:$0xf] %v18_v3  ;;  %s48_s0 = smov 6  }
   0xa   :  { %v24_v4 = vld [vmem:[#allocation1 + $0x2] ss:$8 sm:$0xf]   ;;  %v20_v5 = vld [vmem:[#allocation1] ss:$8 sm:$0xf]  }
   0xb   :  { %25 = vrot.lane.b32.xlu0 %v24_v4, %s48_s0  ;;  %v30_v6 = vld [vmem:[#allocation1 + $0x1] ss:$8 sm:$0xf]   ;;  %22 = vst.msk [vmem:[#allocation0] sm:$0xf] %vm21_vm0, %v20_v5  }
   0xf   :  { %31 = vrot.lane.b32.xlu0 %v30_v6, %s49_s14 }
  0x7d   :  { %v26_v7 = vpop.permute.xlu0 %25  }
  0x7e   :  { %28 = vst.msk [vmem:[#allocation0] sm:$0xf] %vm27_vm1, %v26_v7  }
  0x81   :  { %v32_v8 = vpop.permute.xlu0 %31  }
  0x82   :  { %34 = vst.msk [vmem:[#allocation0] sm:$0xf] %vm33_vm2, %v32_v8  }
  0x89   :  { %v38_v9 = vld [vmem:[#allocation0] sm:$0xf] }
  0x8a   :  { %40 = vst [vmem:[%s76_s1] sm:$0xf] %v38_v9 }

// kernel: depthwise_separable.1
= control target key start
LH: loop header
LB: loop body
LE: loop exit
PB: predicated region body
PF: predicated region fallthrough
CT: control target
= control target key end

     0   :  { %s5525_s15 = smov 0   ;;  %s5527_s16 = smov 0   ;;  %s6566_s0 = inlined_call_operand.vmem [shape: f32[2,16,16,4], index: 0, kind: input, shape index: {}, may-alias: {0,1,2}]   ;;  %s6567_s1 = inlined_call_operand.vmem [shape: f32[2,16,16,4], index: 1, kind: input, shape index: {}, may-alias: {0,1,2}]   ;;  %s6568_s2 = inlined_call_operand.vmem [shape: f32[2,16,16,4], index: 2, kind: input, shape index: {}, may-alias: {0,1,2}]   ;;  %s6569_s3 = inlined_call_operand.vmem [shape: f32[9,4,8], index: 3, kind: input, shape index: {}]   ;;  %s6570_s4 = inlined_call_operand.vmem [shape: f32[2,16,16,8], index: 4, kind: output, shape index: {}]  }
   0x1   :  { %s5529_s17 = smov 0  }
   0x2 LB: > { %s26_s0 = sadd.s32 1, %s5493_s16  ;;  %p4124_p0 = scmp.ge.s32.totalorder %s5497_s17, 1  ;;  %s5497_s17 = sphi %s5529_s17, %s14_s17   ;;  %s5493_s16 = sphi %s5527_s16, %s6680_s16   ;;  %s5489_s15 = sphi %s5525_s15, %s6679_s15  }
   0x3   : > { %p28_p1 = scmp.ge.s32.totalorder %s26_s0, 2  ;;  %p248_p2 = scmp.lt.s32.totalorder %s5497_s17, 3 }
   0x5   : > { %s6682_s0 = smov (%p28_p1, %s26_s0), 0  ;;  %p249_p3 = pnand %p4124_p0, %p248_p2 }
   0x7   : > { %252 = sbr.rel (%p249_p3) target bundleno = 546 (0x222), region = 36 }
   0xe   : > { %v4133_v0 = vld [vmem:[%s6569_s3 + $0x4] sm:$0xf]  ;;  %vm665_vm0 = vcmask 1043456   ;;  %vm366_vm1 = vcmask 24576   ;;  %vm436_vm2 = vcmask 31744   ;;  %v5499_v1 = vmov 0.0  }
   0xf   : > { %4742 = vmatprep.subr.msk.mxu1 %vm665_vm0, %v4133_v0  ;;  %367 = vst.msk [vmem:[#allocation2] sm:$0x1] %vm366_vm1, %v5499_v1  ;;  %368 = vst.msk [vmem:[#allocation2 + $0x18] sm:$0x1] %vm366_vm1, %v5499_v1  ;;  %vm483_vm3 = vcmask 25600   ;;  %p328_p4 = scmp.lt.s32.totalorder %s5489_s15, 1 }
  0x10   : > { %482 = vst.msk [vmem:[#allocation2 + $0x8] sm:$0xff] %vm436_vm2, %v5499_v1  ;;  %499 = vst.msk [vmem:[#allocation2 + $0x1a0] sm:$0xff] %vm436_vm2, %v5499_v1  ;;  %v5590_v2 = vld [vmem:[%s6569_s3 + $0x10] sm:$0xf]  ;;  %v534_v3 = vld [vmem:[%s6569_s3] sm:$0xf]  ;;  %4743 = vmatpush3.msk.msra.mxu1 %vm665_vm0, %v4133_v0 }
  0x11   : > { %369 = vst.msk [vmem:[#allocation2 + $0x30] sm:$0x1] %vm366_vm1, %v5499_v1  ;;  %370 = vst.msk [vmem:[#allocation2 + $0x48] sm:$0x1] %vm366_vm1, %v5499_v1  ;;  %4942 = vmatprep.subr.msk.mxu0 %vm665_vm0, %v5590_v2  ;;  %v5604_v4 = vld [vmem:[%s6569_s3 + $0x14] sm:$0xf]  ;;  %4792 = vmatprep.subr.msk.mxu1 %vm665_vm0, %v534_v3 }
  0x12   : > { %371 = vst.msk [vmem:[#allocation2 + $0x60] sm:$0x1] %vm366_vm1, %v5499_v1  ;;  %372 = vst.msk [vmem:[#allocation2 + $0x78] sm:$0x1] %vm366_vm1, %v5499_v1  ;;  %4943 = vmatpush3.msk.msra.mxu0 %vm665_vm0, %v5590_v2  ;;  %s6684_s15 = smov (!%p328_p4, %s5489_s15), 1  ;;  %vm3949_vm4 = vcmask 64512  }
  0x13   : > { %373 = vst.msk [vmem:[#allocation2 + $0x90] sm:$0x1] %vm366_vm1, %v5499_v1  ;;  %374 = vst.msk [vmem:[#allocation2 + $0xa8] sm:$0x1] %vm366_vm1, %v5499_v1  ;;  %4992 = vmatprep.subr.msk.mxu0 %vm665_vm0, %v5604_v4  ;;  %s4441_s25 = sshll.u32 %s6684_s15, 8 }
  0x14   : > { %375 = vst.msk [vmem:[#allocation2 + $0xc0] sm:$0x1] %vm366_vm1, %v5499_v1  ;;  %376 = vst.msk [vmem:[#allocation2 + $0xd8] sm:$0x1] %vm366_vm1, %v5499_v1  ;;  %s5620_s28 = scalar_lea.vmem %s6567_s1, %s4441_s25  ;;  %v5634_v11 = vld [vmem:[%s6569_s3 + $0x8] sm:$0xf]  ;;  %s6491_s2 = scalar_lea.vmem %s6570_s4, %s4441_s25 }
  0x15   : > { %377 = vst.msk [vmem:[#allocation2 + $0xf0] sm:$0x1] %vm366_vm1, %v5499_v1  ;;  %378 = vst.msk [vmem:[#allocation2 + $0x108] sm:$0x1] %vm366_vm1, %v5499_v1  ;;  %v403_v5 = vld [vmem:[%s5620_s28] sm:$0xff]  ;;  %v404_v6 = vld [vmem:[%s5620_s28 + $0x8] sm:$0xff] }
  0x16   : > { %379 = vst.msk [vmem:[#allocation2 + $0x120] sm:$0x1] %vm366_vm1, %v5499_v1  ;;  %380 = vst.msk [vmem:[#allocation2 + $0x138] sm:$0x1] %vm366_vm1, %v5499_v1  ;;  %v405_v7 = vld [vmem:[%s5620_s28 + $0x10] sm:$0xff]  ;;  %v406_v8 = vld [vmem:[%s5620_s28 + $0x18] sm:$0xff] }
  0x17   : > { %381 = vst.msk [vmem:[#allocation2 + $0x150] sm:$0x1] %vm366_vm1, %v5499_v1  ;;  %382 = vst.msk [vmem:[#allocation2 + $0x168] sm:$0x1] %vm366_vm1, %v5499_v1  ;;  %v407_v9 = vld [vmem:[%s5620_s28 + $0x20] sm:$0xff]  ;;  %v408_v10 = vld [vmem:[%s5620_s28 + $0x28] sm:$0xff] }
  0x18   : > { %383 = vst.msk [vmem:[#allocation2 + $0x180] sm:$0x1] %vm366_vm1, %v5499_v1  ;;  %384 = vst.msk [vmem:[#allocation2 + $0x198] sm:$0x1] %vm366_vm1, %v5499_v1  ;;  %v409_v14 = vld [vmem:[%s5620_s28 + $0x30] sm:$0xff]  ;;  %v410_v15 = vld [vmem:[%s5620_s28 + $0x38] sm:$0xff] }
  0x19   : > { %385 = vst.msk [vmem:[#allocation2 + $0x11] sm:$0x1] %vm366_vm1, %v5499_v1  ;;  %386 = vst.msk [vmem:[#allocation2 + $0x29] sm:$0x1] %vm366_vm1, %v5499_v1  ;;  %v411_v16 = vld [vmem:[%s5620_s28 + $0x40] sm:$0xff]  ;;  %v412_v17 = vld [vmem:[%s5620_s28 + $0x48] sm:$0xff] }
  0x1a   : > { %387 = vst.msk [vmem:[#allocation2 + $0x41] sm:$0x1] %vm366_vm1, %v5499_v1  ;;  %388 = vst.msk [vmem:[#allocation2 + $0x59] sm:$0x1] %vm366_vm1, %v5499_v1  ;;  %v413_v18 = vld [vmem:[%s5620_s28 + $0x50] sm:$0xff]  ;;  %v414_v19 = vld [vmem:[%s5620_s28 + $0x58] sm:$0xff] }
  0x1b   : > { %389 = vst.msk [vmem:[#allocation2 + $0x71] sm:$0x1] %vm366_vm1, %v5499_v1  ;;  %390 = vst.msk [vmem:[#allocation2 + $0x89] sm:$0x1] %vm366_vm1, %v5499_v1  ;;  %v415_v20 = vld [vmem:[%s5620_s28 + $0x60] sm:$0xff]  ;;  %v416_v21 = vld [vmem:[%s5620_s28 + $0x68] sm:$0xff] }
  0x1c   : > { %391 = vst.msk [vmem:[#allocation2 + $0xa1] sm:$0x1] %vm366_vm1, %v5499_v1  ;;  %392 = vst.msk [vmem:[#allocation2 + $0xb9] sm:$0x1] %vm366_vm1, %v5499_v1  ;;  %v417_v22 = vld [vmem:[%s5620_s28 + $0x70] sm:$0xff]  ;;  %v418_v23 = vld [vmem:[%s5620_s28 + $0x78] sm:$0xff] }
  0x1d   : > { %393 = vst.msk [vmem:[#allocation2 + $0xd1] sm:$0x1] %vm366_vm1, %v5499_v1  ;;  %394 = vst.msk [vmem:[#allocation2 + $0xe9] sm:$0x1] %vm366_vm1, %v5499_v1  ;;  %v419_v24 = vld [vmem:[%s5620_s28 + $0x80] sm:$0xff]  ;;  %v420_v25 = vld [vmem:[%s5620_s28 + $0x88] sm:$0xff] }
  0x1e   : > { %395 = vst.msk [vmem:[#allocation2 + $0x101] sm:$0x1] %vm366_vm1, %v5499_v1  ;;  %396 = vst.msk [vmem:[#allocation2 + $0x119] sm:$0x1] %vm366_vm1, %v5499_v1  ;;  %v421_v26 = vld [vmem:[%s5620_s28 + $0x90] sm:$0xff]  ;;  %v422_v27 = vld [vmem:[%s5620_s28 + $0x98] sm:$0xff] }
  0x1f   : > { %397 = vst.msk [vmem:[#allocation2 + $0x131] sm:$0x1] %vm366_vm1, %v5499_v1  ;;  %398 = vst.msk [vmem:[#allocation2 + $0x149] sm:$0x1] %vm366_vm1, %v5499_v1  ;;  %v423_v28 = vld [vmem:[%s5620_s28 + $0xa0] sm:$0xff]  ;;  %v424_v29 = vld [vmem:[%s5620_s28 + $0xa8] sm:$0xff] }
  0x20   : > { %399 = vst.msk [vmem:[#allocation2 + $0x161] sm:$0x1] %vm366_vm1, %v5499_v1  ;;  %400 = vst.msk [vmem:[#allocation2 + $0x179] sm:$0x1] %vm366_vm1, %v5499_v1  ;;  %v5683_v33 = vld [vmem:[%s6569_s3 + $0x18] sm:$0xf] }
  0x21   : > { %401 = vst.msk [vmem:[#allocation2 + $0x191] sm:$0x1] %vm366_vm1, %v5499_v1  ;;  %402 = vst.msk [vmem:[#allocation2 + $0x1a9] sm:$0x1] %vm366_vm1, %v5499_v1  ;;  %v425_v38 = vld [vmem:[%s5620_s28 + $0xb0] sm:$0xff]  ;;  %v426_v39 = vld [vmem:[%s5620_s28 + $0xb8] sm:$0xff] }
  0x22   : > { %481 = vst.msk [vmem:[#allocation2] sm:$0xff] %vm436_vm2, %v5499_v1  ;;  %498 = vst.msk [vmem:[#allocation2 + $0x198] sm:$0xff] %vm436_vm2, %v5499_v1  ;;  %v427_v40 = vld [vmem:[%s5620_s28 + $0xc0] sm:$0xff]  ;;  %v428_v42 = vld [vmem:[%s5620_s28 + $0xc8] sm:$0xff] }
  0x23   : > { %484 = vst.msk [vmem:[#allocation2 + $0x10] sm:$0x3] %vm483_vm3, %v5499_v1  ;;  %501 = vst.msk [vmem:[#allocation2 + $0x1a8] sm:$0x3] %vm483_vm3, %v5499_v1  ;;  %v429_v44 = vld [vmem:[%s5620_s28 + $0xd0] sm:$0xff]  ;;  %v430_v45 = vld [vmem:[%s5620_s28 + $0xd8] sm:$0xff] }
  0x24   : > { %437 = vst.msk [vmem:[#allocation2 + $0x19] sm:$0xff] %vm436_vm2, %v403_v5  ;;  %438 = vst.msk [vmem:[#allocation2 + $0x21] sm:$0xff] %vm436_vm2, %v404_v6  ;;  %v431_v46 = vld [vmem:[%s5620_s28 + $0xe0] sm:$0xff]  ;;  %v432_v47 = vld [vmem:[%s5620_s28 + $0xe8] sm:$0xff] }
  0x25   : > { %439 = vst.msk [vmem:[#allocation2 + $0x31] sm:$0xff] %vm436_vm2, %v405_v7  ;;  %440 = vst.msk [vmem:[#allocation2 + $0x39] sm:$0xff] %vm436_vm2, %v406_v8  ;;  %v433_v57 = vld [vmem:[%s5620_s28 + $0xf0] sm:$0xff]  ;;  %v434_v58 = vld [vmem:[%s5620_s28 + $0xf8] sm:$0xff] }
  0x26   : > { %441 = vst.msk [vmem:[#allocation2 + $0x49] sm:$0xff] %vm436_vm2, %v407_v9  ;;  %442 = vst.msk [vmem:[#allocation2 + $0x51] sm:$0xff] %vm436_vm2, %v408_v10  ;;  %v5812_v63 = vld [vmem:[%s6569_s3 + $0x1c] sm:$0xf] }
  0x27   : > { %443 = vst.msk [vmem:[#allocation2 + $0x61] sm:$0xff] %vm436_vm2, %v409_v14  ;;  %444 = vst.msk [vmem:[#allocation2 + $0x69] sm:$0xff] %vm436_vm2, %v410_v15 }
  0x28   : > { %445 = vst.msk [vmem:[#allocation2 + $0x79] sm:$0xff] %vm436_vm2, %v411_v16  ;;  %446 = vst.msk [vmem:[#allocation2 + $0x81] sm:$0xff] %vm436_vm2, %v412_v17 }
  0x29   : > { %v535_v12 = vld [vmem:[#allocation2 + $0x1] sm:$0xff]  ;;  %447 = vst.msk [vmem:[#allocation2 + $0x91] sm:$0xff] %vm436_vm2, %v413_v18  ;;  %448 = vst.msk [vmem:[#allocation2 + $0x99] sm:$0xff] %vm436_vm2, %v414_v19 }
  0x2a   : > { %v536_v13 = vld [vmem:[#allocation2 + $0x9] sm:$0xff]  ;;  %4744 = vmatprep.mubr.msk.f32.mxu1 %vm436_vm2, %v535_v12  ;;  %449 = vst.msk [vmem:[#allocation2 + $0xa9] sm:$0xff] %vm436_vm2, %v415_v20  ;;  %450 = vst.msk [vmem:[#allocation2 + $0xb1] sm:$0xff] %vm436_vm2, %v416_v21 }
  0x2b   : > { %4745 = vmatmul.mubr.msk.f32.vlgmr.msra.gmra.mrb[0].mxu1 %vm436_vm2, %v536_v13  ;;  %451 = vst.msk [vmem:[#allocation2 + $0xc1] sm:$0xff] %vm436_vm2, %v417_v22  ;;  %452 = vst.msk [vmem:[#allocation2 + $0xc9] sm:$0xff] %vm436_vm2, %v418_v23  ;;  %v537_v30 = vld [vmem:[#allocation2 + $0x19] sm:$0xff]  ;;  %v538_v31 = vld [vmem:[#allocation2 + $0x21] sm:$0xff] }
  0x2c   : > { %4793 = vmatpush3.msk.msra.mxu1 %vm665_vm0, %v534_v3  ;;  %453 = vst.msk [vmem:[#allocation2 + $0xd9] sm:$0xff] %vm436_vm2, %v419_v24  ;;  %454 = vst.msk [vmem:[#allocation2 + $0xe1] sm:$0xff] %vm436_vm2, %v420_v25  ;;  %v5673_v32 = vld [vmem:[#allocation2 + $0x31] sm:$0xff]  ;;  %4747 = vmatprep.mubr.msk.f32.mxu1 %vm436_vm2, %v537_v30  ;;  %v5691_v34 = vld [vmem:[#allocation2 + $0x39] sm:$0xff] }
  0x2d   : > { %4842 = vmatprep.subr.msk.mxu1 %vm665_vm0, %v5634_v11  ;;  %455 = vst.msk [vmem:[#allocation2 + $0xf1] sm:$0xff] %vm436_vm2, %v421_v26  ;;  %456 = vst.msk [vmem:[#allocation2 + $0xf9] sm:$0xff] %vm436_vm2, %v422_v27  ;;  %4944 = vmatprep.mubr.msk.f32.mxu0 %vm436_vm2, %v537_v30  ;;  %v5695_v35 = vld [vmem:[#allocation2 + $0x49] sm:$0xff]  ;;  %v5707_v36 = vld [vmem:[#allocation2 + $0x51] sm:$0xff] }
  0x2e   : > { %457 = vst.msk [vmem:[#allocation2 + $0x109] sm:$0xff] %vm436_vm2, %v423_v28  ;;  %458 = vst.msk [vmem:[#allocation2 + $0x111] sm:$0xff] %vm436_vm2, %v424_v29  ;;  %4945 = vmatmul.mubr.msk.f32.vlgmr.msra.gmra.mrb[0].mxu0 %vm436_vm2, %v538_v31  ;;  %v5709_v37 = vld [vmem:[#allocation2 + $0x61] sm:$0xff]  ;;  %v5723_v41 = vld [vmem:[#allocation2 + $0x69] sm:$0xff] }
  0x2f   : > { %4748 = vmatmul.mubr.msk.f32.gmra.mrb[2].mxu1 %vm436_vm2, %v538_v31  ;;  %4993 = vmatpush3.msk.msra.mxu0 %vm665_vm0, %v5604_v4  ;;  %459 = vst.msk [vmem:[#allocation2 + $0x121] sm:$0xff] %vm436_vm2, %v425_v38  ;;  %460 = vst.msk [vmem:[#allocation2 + $0x129] sm:$0xff] %vm436_vm2, %v426_v39  ;;  %v5728_v43 = vld [vmem:[#allocation2 + $0x79] sm:$0xff]  ;;  %v5746_v48 = vld [vmem:[#allocation2 + $0x81] sm:$0xff] }
  0x30   : > { %4750 = vmatprep.mubr.msk.f32.mxu1 %vm436_vm2, %v5673_v32  ;;  %4947 = vmatprep.mubr.msk.f32.mxu0 %vm436_vm2, %v5673_v32  ;;  %461 = vst.msk [vmem:[#allocation2 + $0x139] sm:$0xff] %vm436_vm2, %v427_v40  ;;  %462 = vst.msk [vmem:[#allocation2 + $0x141] sm:$0xff] %vm436_vm2, %v428_v42  ;;  %v5749_v49 = vld [vmem:[#allocation2 + $0x91] sm:$0xff]  ;;  %v5759_v50 = vld [vmem:[#allocation2 + $0x99] sm:$0xff] }
  0x31   : > { %5042 = vmatprep.subr.msk.mxu0 %vm665_vm0, %v5683_v33  ;;  %463 = vst.msk [vmem:[#allocation2 + $0x151] sm:$0xff] %vm436_vm2, %v429_v44  ;;  %464 = vst.msk [vmem:[#allocation2 + $0x159] sm:$0xff] %vm436_vm2, %v430_v45  ;;  %v5761_v51 = vld [vmem:[#allocation2 + $0xa9] sm:$0xff]  ;;  %v5771_v52 = vld [vmem:[#allocation2 + $0xb1] sm:$0xff] }
  0x32   : > { %4948 = vmatmul.mubr.msk.f32.gmra.mrb[2].mxu0 %vm436_vm2, %v5691_v34  ;;  %465 = vst.msk [vmem:[#allocation2 + $0x169] sm:$0xff] %vm436_vm2, %v431_v46  ;;  %466 = vst.msk [vmem:[#allocation2 + $0x171] sm:$0xff] %vm436_vm2, %v432_v47  ;;  %v5773_v53 = vld [vmem:[#allocation2 + $0xc1] sm:$0xff]  ;;  %v5783_v54 = vld [vmem:[#allocation2 + $0xc9] sm:$0xff] }
  0x33   : > { %4751 = vmatmul.mubr.msk.f32.gmra.mrb[4].mxu1 %vm436_vm2, %v5691_v34  ;;  %4950 = vmatprep.mubr.msk.f32.mxu0 %vm436_vm2, %v5695_v35  ;;  %6617 = vst [vmem:[#allocation3_spill] sm:$0xff] %v5783_v54  ;;  %v5785_v55 = vld [vmem:[#allocation2 + $0x1a] sm:$0xff]  ;;  %467 = vst.msk [vmem:[#allocation2 + $0x181] sm:$0xff] %vm436_vm2, %v433_v57  ;;  %v5803_v60 = vld [vmem:[#allocation2 + $0x22] sm:$0xff] }
  0x34   : > { %4753 = vmatprep.mubr.msk.f32.mxu1 %vm436_vm2, %v5695_v35  ;;  %v5787_v56 = vld [vmem:[#allocation2 + $0xd9] sm:$0xff]  ;;  %468 = vst.msk [vmem:[#allocation2 + $0x189] sm:$0xff] %vm436_vm2, %v434_v58  ;;  %v5801_v59 = vld [vmem:[#allocation2 + $0xe1] sm:$0xff]  ;;  %v5805_v61 = vld [vmem:[#allocation2 + $0xf1] sm:$0xff] }
  0x35   : > { %6618 = vst [vmem:[#allocation4_spill] sm:$0xff] %v5787_v56  ;;  %6619 = vst [vmem:[#allocation5_spill] sm:$0xff] %v5801_v59  ;;  %v5807_v62 = vld [vmem:[#allocation2 + $0x32] sm:$0xff]  ;;  %v5824_v1 = vld [vmem:[#allocation2 + $0x3a] sm:$0xff] }
  0x36   : > { %4951 = vmatmul.mubr.msk.f32.gmra.mrb[4].mxu0 %vm436_vm2, %v5707_v36  ;;  %6620 = vst [vmem:[#allocation6_spill] sm:$0xff] %v5805_v61  ;;  %v5822_v0 = vld [vmem:[#allocation2 + $0xf9] sm:$0xff]  ;;  %v5828_v3 = vld [vmem:[#allocation2 + $0x109] sm:$0xff]  ;;  %v5842_v5 = vld [vmem:[#allocation2 + $0x111] sm:$0xff] }
  0x37   : > { %4754 = vmatmul.mubr.msk.f32.gmra.mrb[6].mxu1 %vm436_vm2, %v5707_v36  ;;  %4953 = vmatprep.mubr.msk.f32.mxu0 %vm436_vm2, %v5709_v37  ;;  %6621 = vst [vmem:[#allocation7_spill] sm:$0xff] %v5822_v0  ;;  %6622 = vst [vmem:[#allocation8_spill] sm:$0xff] %v5828_v3  ;;  %v5830_v4 = vld [vmem:[#allocation2 + $0x4a] sm:$0xff]  ;;  %v5844_v6 = vld [vmem:[#allocation2 + $0x52] sm:$0xff] }
  0x38   : > { %4756 = vmatprep.mubr.msk.f32.mxu1 %vm436_vm2, %v5709_v37  ;;  %6623 = vst [vmem:[#allocation9_spill] sm:$0xff] %v5842_v5  ;;  %v5846_v7 = vld [vmem:[#allocation2 + $0x121] sm:$0xff]  ;;  %v5858_v9 = vld [vmem:[#allocation2 + $0x129] sm:$0xff]  ;;  %v5862_v12 = vld [vmem:[#allocation2 + $0x139] sm:$0xff] }
  0x39   : > { %6624 = vst [vmem:[#allocation10_spill] sm:$0xff] %v5846_v7  ;;  %v5848_v8 = vld [vmem:[#allocation2 + $0x62] sm:$0xff]  ;;  %6625 = vst [vmem:[#allocation11_spill] sm:$0xff] %v5858_v9  ;;  %v5860_v10 = vld [vmem:[#allocation2 + $0x6a] sm:$0xff] }
  0x3a   : > { %4954 = vmatmul.mubr.msk.f32.gmra.mrb[6].mxu0 %vm436_vm2, %v5723_v41  ;;  %6626 = vst [vmem:[#allocation12_spill] sm:$0xff] %v5862_v12  ;;  %v5864_v13 = vld [vmem:[#allocation2 + $0x7a] sm:$0xff]  ;;  %v5876_v15 = vld [vmem:[#allocation2 + $0x82] sm:$0xff]  ;;  %v5878_v16 = vld [vmem:[#allocation2 + $0x151] sm:$0xff] }
  0x3b   : > { %4757 = vmatmul.mubr.msk.f32.gmra.mrb[8].mxu1 %vm436_vm2, %v5723_v41  ;;  %4956 = vmatprep.mubr.msk.f32.mxu0 %vm436_vm2, %v5728_v43  ;;  %v5874_v14 = vld [vmem:[#allocation2 + $0x141] sm:$0xff]  ;;  %6628 = vst [vmem:[#allocation14_spill] sm:$0xff] %v5878_v16  ;;  %v5880_v17 = vld [vmem:[#allocation2 + $0x92] sm:$0xff]  ;;  %v5894_v20 = vld [vmem:[#allocation2 + $0x169] sm:$0xff] }
  0x3c   : > { %4759 = vmatprep.mubr.msk.f32.mxu1 %vm436_vm2, %v5728_v43  ;;  %6627 = vst [vmem:[#allocation13_spill] sm:$0xff] %v5874_v14  ;;  %v5890_v18 = vld [vmem:[#allocation2 + $0x159] sm:$0xff]  ;;  %6630 = vst [vmem:[#allocation16_spill] sm:$0xff] %v5894_v20  ;;  %v5896_v21 = vld [vmem:[#allocation2 + $0xaa] sm:$0xff] }
  0x3d   : > { %6629 = vst [vmem:[#allocation15_spill] sm:$0xff] %v5890_v18  ;;  %v5892_v19 = vld [vmem:[#allocation2 + $0x9a] sm:$0xff]  ;;  %v5906_v22 = vld [vmem:[#allocation2 + $0x171] sm:$0xff]  ;;  %v5910_v25 = vld [vmem:[#allocation2 + $0xc2] sm:$0xff] }
  0x3e   : > { %4957 = vmatmul.mubr.msk.f32.gmra.mrb[8].mxu0 %vm436_vm2, %v5746_v48  ;;  %6631 = vst [vmem:[#allocation17_spill] sm:$0xff] %v5906_v22  ;;  %v5908_v23 = vld [vmem:[#allocation2 + $0xb2] sm:$0xff]  ;;  %v502_v24 = vld [vmem:[#allocation2] sm:$0xff]  ;;  %v503_v26 = vld [vmem:[#allocation2 + $0x8] sm:$0xff] }
  0x3f   : > { %4760 = vmatmul.mubr.msk.f32.gmra.mrb[10].mxu1 %vm436_vm2, %v5746_v48  ;;  %4959 = vmatprep.mubr.msk.f32.mxu0 %vm436_vm2, %v5749_v49  ;;  %v5919_v27 = vld [vmem:[#allocation2 + $0xca] sm:$0xff]  ;;  %v5921_v28 = vld [vmem:[#allocation2 + $0x18] sm:$0xff]  ;;  %v5937_v31 = vld [vmem:[#allocation2 + $0x20] sm:$0xff] }
  0x40   : > { %4762 = vmatprep.mubr.msk.f32.mxu1 %vm436_vm2, %v5749_v49  ;;  %6632 = vst [vmem:[#allocation18_spill] sm:$0xff] %v5921_v28  ;;  %v5923_v29 = vld [vmem:[#allocation2 + $0xda] sm:$0xff]  ;;  %v5931_v30 = vld [vmem:[%s6569_s3 + $0xc] sm:$0xf]  ;;  %6633 = vst [vmem:[#allocation19_spill] sm:$0xff] %v5937_v31 }
  0x41   : > { %v5943_v38 = vld [vmem:[#allocation2 + $0x30] sm:$0xff]  ;;  %v5959_v40 = vld [vmem:[#allocation2 + $0xfa] sm:$0xff]  ;;  %v5961_v42 = vld [vmem:[#allocation2 + $0x48] sm:$0xff] }
  0x42   : > { %4960 = vmatmul.mubr.msk.f32.gmra.mrb[10].mxu0 %vm436_vm2, %v5759_v50  ;;  %6634 = vst [vmem:[#allocation20_spill] sm:$0xff] %v5943_v38  ;;  %v5945_v39 = vld [vmem:[#allocation2 + $0xf2] sm:$0xff]  ;;  %6636 = vst [vmem:[#allocation22_spill] sm:$0xff] %v5961_v42  ;;  %v5963_v44 = vld [vmem:[#allocation2 + $0x10a] sm:$0xff] }
  0x43   : > { %4763 = vmatmul.mubr.msk.f32.gmra.mrb[12].mxu1 %vm436_vm2, %v5759_v50  ;;  %4962 = vmatprep.mubr.msk.f32.mxu0 %vm436_vm2, %v5761_v51  ;;  %v5973_v45 = vld [vmem:[#allocation2 + $0x50] sm:$0xff]  ;;  %v5977_v47 = vld [vmem:[#allocation2 + $0x60] sm:$0xff]  ;;  %v5989_v58 = vld [vmem:[#allocation2 + $0x68] sm:$0xff] }
  0x44   : > { %4765 = vmatprep.mubr.msk.f32.mxu1 %vm436_vm2, %v5761_v51  ;;  %6637 = vst [vmem:[#allocation23_spill] sm:$0xff] %v5973_v45  ;;  %v5975_v46 = vld [vmem:[#allocation2 + $0x112] sm:$0xff]  ;;  %6638 = vst [vmem:[#allocation24_spill] sm:$0xff] %v5977_v47  ;;  %v5979_v57 = vld [vmem:[#allocation2 + $0x122] sm:$0xff] }
  0x45   : > { %6639 = vst [vmem:[#allocation25_spill] sm:$0xff] %v5989_v58 }
  0x46   : > { %4963 = vmatmul.mubr.msk.f32.gmra.mrb[12].mxu0 %vm436_vm2, %v5771_v52 }
  0x47   : > { %4766 = vmatmul.mubr.msk.f32.gmra.mrb[14].mxu1 %vm436_vm2, %v5771_v52  ;;  %4965 = vmatprep.mubr.msk.f32.mxu0 %vm436_vm2, %v5773_v53 }
  0x48   : > { %4768 = vmatprep.mubr.msk.f32.mxu1 %vm436_vm2, %v5773_v53 }
  0x4a   : > { %4966 = vmatmul.mubr.msk.f32.gmra.mrb[14].mxu0 %vm436_vm2, %v5783_v54 }
  0x4b   : > { %4769 = vmatmul.mubr.msk.f32.gmra.mrb[16].mxu1 %vm436_vm2, %v5783_v54  ;;  %4994 = vmatprep.mubr.msk.f32.mxu0 %vm436_vm2, %v5785_v55  ;;  %v6067_v54 = vld [vmem:[#allocation2 + $0xe0] sm:$0xff] }
  0x4c   : > { %4771 = vmatprep.mubr.msk.f32.mxu1 %vm436_vm2, %v5787_v56  ;;  %v6055_v56 = vld [vmem:[#allocation2 + $0x18a] sm:$0xff] }
  0x4d   : > { %6647 = vst [vmem:[#allocation33_spill] sm:$0xff] %v6055_v56 }
  0x4e   : > { %4995 = vmatmul.mubr.msk.f32.vlgmr.msra.gmra.mrb[0].mxu0 %vm436_vm2, %v5803_v60 }
  0x4f   : > { %4772 = vmatmul.mubr.msk.f32.gmra.mrb[18].mxu1 %vm436_vm2, %v5801_v59  ;;  %5043 = vmatpush3.msk.msra.mxu0 %vm665_vm0, %v5683_v33  ;;  %v5939_v33 = vld [vmem:[#allocation2 + $0xe2] sm:$0xff] }
  0x50   : > { %4774 = vmatprep.mubr.msk.f32.mxu1 %vm436_vm2, %v5805_v61  ;;  %4997 = vmatprep.mubr.msk.f32.mxu0 %vm436_vm2, %v5807_v62  ;;  %v6041_v61 = vld [vmem:[#allocation2 + $0xc0] sm:$0xff] }
  0x51   : > { %5092 = vmatprep.subr.msk.mxu0 %vm665_vm0, %v5812_v63  ;;  %v6043_v59 = vld [vmem:[#allocation2 + $0x182] sm:$0xff] }
  0x52   : > { %4998 = vmatmul.mubr.msk.f32.gmra.mrb[2].mxu0 %vm436_vm2, %v5824_v1  ;;  %6646 = vst [vmem:[#allocation32_spill] sm:$0xff] %v6043_v59 }
  0x53   : > { %4775 = vmatmul.mubr.msk.f32.gmra.mrb[20].mxu1 %vm436_vm2, %v5822_v0  ;;  %5000 = vmatprep.mubr.msk.f32.mxu0 %vm436_vm2, %v5830_v4  ;;  %v6039_v0 = vld [vmem:[#allocation2 + $0x172] sm:$0xff] }
  0x54   : > { %4777 = vmatprep.mubr.msk.f32.mxu1 %vm436_vm2, %v5828_v3  ;;  %v6037_v3 = vld [vmem:[#allocation2 + $0xb0] sm:$0xff]  ;;  %6645 = vst [vmem:[#allocation31_spill] sm:$0xff] %v6039_v0 }
  0x55   : > { %6644 = vst [vmem:[#allocation30_spill] sm:$0xff] %v6037_v3 }
  0x56   : > { %5001 = vmatmul.mubr.msk.f32.gmra.mrb[4].mxu0 %vm436_vm2, %v5844_v6 }
  0x57   : > { %4778 = vmatmul.mubr.msk.f32.gmra.mrb[22].mxu1 %vm436_vm2, %v5842_v5  ;;  %5003 = vmatprep.mubr.msk.f32.mxu0 %vm436_vm2, %v5848_v8  ;;  %v6027_v5 = vld [vmem:[#allocation2 + $0x16a] sm:$0xff] }
  0x58   : > { %4780 = vmatprep.mubr.msk.f32.mxu1 %vm436_vm2, %v5846_v7  ;;  %v6025_v7 = vld [vmem:[#allocation2 + $0xa8] sm:$0xff] }
  0x5a   : > { %5004 = vmatmul.mubr.msk.f32.gmra.mrb[6].mxu0 %vm436_vm2, %v5860_v10 }
  0x5b   : > { %4781 = vmatmul.mubr.msk.f32.gmra.mrb[24].mxu1 %vm436_vm2, %v5858_v9  ;;  %5006 = vmatprep.mubr.msk.f32.mxu0 %vm436_vm2, %v5864_v13  ;;  %v6023_v9 = vld [vmem:[#allocation2 + $0x15a] sm:$0xff] }
  0x5c   : > { %4783 = vmatprep.mubr.msk.f32.mxu1 %vm436_vm2, %v5862_v12  ;;  %v6021_v12 = vld [vmem:[#allocation2 + $0x98] sm:$0xff] }
  0x5d   : > { %6643 = vst [vmem:[#allocation29_spill] sm:$0xff] %v6021_v12 }
  0x5e   : > { %5007 = vmatmul.mubr.msk.f32.gmra.mrb[8].mxu0 %vm436_vm2, %v5876_v15 }
  0x5f   : > { %4784 = vmatmul.mubr.msk.f32.gmra.mrb[26].mxu1 %vm436_vm2, %v5874_v14  ;;  %5009 = vmatprep.mubr.msk.f32.mxu0 %vm436_vm2, %v5880_v17  ;;  %v6011_v14 = vld [vmem:[#allocation2 + $0x152] sm:$0xff] }
  0x60   : > { %4786 = vmatprep.mubr.msk.f32.mxu1 %vm436_vm2, %v5878_v16  ;;  %v6009_v16 = vld [vmem:[#allocation2 + $0x90] sm:$0xff] }
  0x61   : > { %6642 = vst [vmem:[#allocation28_spill] sm:$0xff] %v6009_v16 }
  0x62   : > { %5010 = vmatmul.mubr.msk.f32.gmra.mrb[10].mxu0 %vm436_vm2, %v5892_v19 }
  0x63   : > { %4787 = vmatmul.mubr.msk.f32.gmra.mrb[28].mxu1 %vm436_vm2, %v5890_v18  ;;  %5012 = vmatprep.mubr.msk.f32.mxu0 %vm436_vm2, %v5896_v21  ;;  %v6007_v18 = vld [vmem:[#allocation2 + $0x142] sm:$0xff] }
  0x64   : > { %4789 = vmatprep.mubr.msk.f32.mxu1 %vm436_vm2, %v5894_v20  ;;  %v6005_v20 = vld [vmem:[#allocation2 + $0x80] sm:$0xff] }
  0x65   : > { %6641 = vst [vmem:[#allocation27_spill] sm:$0xff] %v6005_v20 }
  0x66   : > { %5013 = vmatmul.mubr.msk.f32.gmra.mrb[12].mxu0 %vm436_vm2, %v5908_v23 }
  0x67   : > { %4790 = vmatmul.mubr.msk.f32.gmra.mrb[30].mxu1 %vm436_vm2, %v5906_v22  ;;  %5015 = vmatprep.mubr.msk.f32.mxu0 %vm436_vm2, %v5910_v25  ;;  %v5995_v22 = vld [vmem:[#allocation2 + $0x13a] sm:$0xff] }
  0x68   : > { %4794 = vmatprep.mubr.msk.f32.mxu1 %vm436_vm2, %v502_v24  ;;  %v5991_v24 = vld [vmem:[#allocation2 + $0x12a] sm:$0xff] }
  0x6a   : > { %5016 = vmatmul.mubr.msk.f32.gmra.mrb[14].mxu0 %vm436_vm2, %v5919_v27 }
  0x6b   : > { %4795 = vmatmul.mubr.msk.f32.vlgmr.msra.gmra.mrb[0].mxu1 %vm436_vm2, %v503_v26  ;;  %5018 = vmatprep.mubr.msk.f32.mxu0 %vm436_vm2, %v5923_v29  ;;  %v5993_v26 = vld [vmem:[#allocation2 + $0x78] sm:$0xff] }
  0x6c   : > { %4797 = vmatprep.mubr.msk.f32.mxu1 %vm436_vm2, %v5921_v28  ;;  %4843 = vmatpush3.msk.msra.mxu1 %vm665_vm0, %v5634_v11  ;;  %v5957_v11 = vld [vmem:[#allocation2 + $0x38] sm:$0xff]  ;;  %6640 = vst [vmem:[#allocation26_spill] sm:$0xff] %v5993_v26 }
  0x6d   : > { %4892 = vmatprep.subr.msk.mxu1 %vm665_vm0, %v5931_v30  ;;  %6635 = vst [vmem:[#allocation21_spill] sm:$0xff] %v5957_v11  ;;  %v6057_v28 = vld [vmem:[#allocation2 + $0xd8] sm:$0xff] }
  0x6e   : > { %5019 = vmatmul.mubr.msk.f32.gmra.mrb[16].mxu0 %vm436_vm2, %v5939_v33 }
  0x6f   : > { %4798 = vmatmul.mubr.msk.f32.gmra.mrb[2].mxu1 %vm436_vm2, %v5937_v31  ;;  %5021 = vmatprep.mubr.msk.f32.mxu0 %vm436_vm2, %v5945_v39  ;;  %v6053_v31 = vld [vmem:[#allocation2 + $0xc8] sm:$0xff] }
  0x70   : > { %4800 = vmatprep.mubr.msk.f32.mxu1 %vm436_vm2, %v5943_v38 }
  0x72   : > { %5022 = vmatmul.mubr.msk.f32.gmra.mrb[18].mxu0 %vm436_vm2, %v5959_v40 }
  0x73   : > { %4801 = vmatmul.mubr.msk.f32.gmra.mrb[4].mxu1 %vm436_vm2, %v5957_v11  ;;  %5024 = vmatprep.mubr.msk.f32.mxu0 %vm436_vm2, %v5963_v44 }
  0x74   : > { %4803 = vmatprep.mubr.msk.f32.mxu1 %vm436_vm2, %v5961_v42 }
  0x76   : > { %5025 = vmatmul.mubr.msk.f32.gmra.mrb[20].mxu0 %vm436_vm2, %v5975_v46 }
  0x77   : > { %4804 = vmatmul.mubr.msk.f32.gmra.mrb[6].mxu1 %vm436_vm2, %v5973_v45  ;;  %5027 = vmatprep.mubr.msk.f32.mxu0 %vm436_vm2, %v5979_v57 }
  0x78   : > { %4806 = vmatprep.mubr.msk.f32.mxu1 %vm436_vm2, %v5977_v47 }
  0x7a   : > { %5028 = vmatmul.mubr.msk.f32.gmra.mrb[22].mxu0 %vm436_vm2, %v5991_v24 }
  0x7b   : > { %4807 = vmatmul.mubr.msk.f32.gmra.mrb[8].mxu1 %vm436_vm2, %v5989_v58  ;;  %5030 = vmatprep.mubr.msk.f32.mxu0 %vm436_vm2, %v5995_v22 }
  0x7c   : > { %4809 = vmatprep.mubr.msk.f32.mxu1 %vm436_vm2, %v5993_v26 }
  0x7e   : > { %5031 = vmatmul.mubr.msk.f32.gmra.mrb[24].mxu0 %vm436_vm2, %v6007_v18 }
  0x7f   : > { %4810 = vmatmul.mubr.msk.f32.gmra.mrb[10].mxu1 %vm436_vm2, %v6005_v20  ;;  %5033 = vmatprep.mubr.msk.f32.mxu0 %vm436_vm2, %v6011_v14 }
  0x80   : > { %4812 = vmatprep.mubr.msk.f32.mxu1 %vm436_vm2, %v6009_v16 }
  0x82   : > { %5034 = vmatmul.mubr.msk.f32.gmra.mrb[26].mxu0 %vm436_vm2, %v6023_v9 }
  0x83   : > { %4813 = vmatmul.mubr.msk.f32.gmra.mrb[12].mxu1 %vm436_vm2, %v6021_v12  ;;  %5036 = vmatprep.mubr.msk.f32.mxu0 %vm436_vm2, %v6027_v5 }
  0x84   : > { %4815 = vmatprep.mubr.msk.f32.mxu1 %vm436_vm2, %v6025_v7 }
  0x86   : > { %5037 = vmatmul.mubr.msk.f32.gmra.mrb[28].mxu0 %vm436_vm2, %v6039_v0  ;;  %v6074_v0 = vld [vmem:[%s6569_s3 + $0x20] sm:$0xf] }
  0x87   : > { %4816 = vmatmul.mubr.msk.f32.gmra.mrb[14].mxu1 %vm436_vm2, %v6037_v3  ;;  %5039 = vmatprep.mubr.msk.f32.mxu0 %vm436_vm2, %v6043_v59  ;;  %v6069_v59 = vld [vmem:[#allocation2 + $0xf0] sm:$0xff] }
  0x88   : > { %4818 = vmatprep.mubr.msk.f32.mxu1 %vm436_vm2, %v6041_v61 }
  0x8a   : > { %5040 = vmatmul.mubr.msk.f32.gmra.mrb[30].mxu0 %vm436_vm2, %v6055_v56  ;;  %v6084_v56 = vld [vmem:[#allocation2 + $0xf8] sm:$0xff] }
  0x8b   : > { %4819 = vmatmul.mubr.msk.f32.gmra.mrb[16].mxu1 %vm436_vm2, %v6053_v31  ;;  %5044 = vmatprep.mubr.msk.f32.mxu0 %vm436_vm2, %v5943_v38  ;;  %v6088_v38 = vld [vmem:[#allocation2 + $0x108] sm:$0xff] }
  0x8c   : > { %4821 = vmatprep.mubr.msk.f32.mxu1 %vm436_vm2, %v6057_v28 }
  0x8e   : > { %5045 = vmatmul.mubr.msk.f32.vlgmr.msra.gmra.mrb[0].mxu0 %vm436_vm2, %v5957_v11  ;;  %v6114_v11 = vld [vmem:[#allocation2 + $0x138] sm:$0xff] }
  0x8f   : > { %4822 = vmatmul.mubr.msk.f32.gmra.mrb[18].mxu1 %vm436_vm2, %v6067_v54  ;;  %5093 = vmatpush3.msk.msra.mxu0 %vm665_vm0, %v5812_v63  ;;  %v6100_v63 = vld [vmem:[#allocation2 + $0x110] sm:$0xff] }
  0x90   : > { %4824 = vmatprep.mubr.msk.f32.mxu1 %vm436_vm2, %v6069_v59  ;;  %5047 = vmatprep.mubr.msk.f32.mxu0 %vm436_vm2, %v5961_v42  ;;  %v6102_v42 = vld [vmem:[#allocation2 + $0x120] sm:$0xff] }
  0x91   : > { %5142 = vmatprep.subr.msk.mxu0 %vm665_vm0, %v6074_v0 }
  0x92   : > { %5048 = vmatmul.mubr.msk.f32.gmra.mrb[2].mxu0 %vm436_vm2, %v5973_v45  ;;  %v6112_v45 = vld [vmem:[#allocation2 + $0x128] sm:$0xff] }
  0x93   : > { %4825 = vmatmul.mubr.msk.f32.gmra.mrb[20].mxu1 %vm436_vm2, %v6084_v56  ;;  %5050 = vmatprep.mubr.msk.f32.mxu0 %vm436_vm2, %v5977_v47  ;;  %v6126_v47 = vld [vmem:[#allocation2 + $0x150] sm:$0xff] }
  0x94   : > { %4827 = vmatprep.mubr.msk.f32.mxu1 %vm436_vm2, %v6088_v38 }
  0x96   : > { %5051 = vmatmul.mubr.msk.f32.gmra.mrb[4].mxu0 %vm436_vm2, %v5989_v58  ;;  %v6124_v58 = vld [vmem:[#allocation2 + $0x140] sm:$0xff] }
  0x97   : > { %4828 = vmatmul.mubr.msk.f32.gmra.mrb[22].mxu1 %vm436_vm2, %v6100_v63  ;;  %5053 = vmatprep.mubr.msk.f32.mxu0 %vm436_vm2, %v5993_v26  ;;  %v6138_v26 = vld [vmem:[#allocation2 + $0x168] sm:$0xff] }
  0x98   : > { %4830 = vmatprep.mubr.msk.f32.mxu1 %vm436_vm2, %v6102_v42 }
  0x9a   : > { %5054 = vmatmul.mubr.msk.f32.gmra.mrb[6].mxu0 %vm436_vm2, %v6005_v20  ;;  %v6136_v20 = vld [vmem:[#allocation2 + $0x158] sm:$0xff] }
  0x9b   : > { %4831 = vmatmul.mubr.msk.f32.gmra.mrb[24].mxu1 %vm436_vm2, %v6112_v45  ;;  %5056 = vmatprep.mubr.msk.f32.mxu0 %vm436_vm2, %v6009_v16  ;;  %v1218_v16 = vld [vmem:[#allocation2 + $0x2] sm:$0xff] }
  0x9c   : > { %4833 = vmatprep.mubr.msk.f32.mxu1 %vm436_vm2, %v6114_v11 }
  0x9e   : > { %5057 = vmatmul.mubr.msk.f32.gmra.mrb[8].mxu0 %vm436_vm2, %v6021_v12  ;;  %v6148_v12 = vld [vmem:[#allocation2 + $0x170] sm:$0xff] }
  0x9f   : > { %4834 = vmatmul.mubr.msk.f32.gmra.mrb[26].mxu1 %vm436_vm2, %v6124_v58  ;;  %5059 = vmatprep.mubr.msk.f32.mxu0 %vm436_vm2, %v6025_v7 }
  0xa0   : > { %4836 = vmatprep.mubr.msk.f32.mxu1 %vm436_vm2, %v6126_v47 }
  0xa2   : > { %5060 = vmatmul.mubr.msk.f32.gmra.mrb[10].mxu0 %vm436_vm2, %v6037_v3  ;;  %v1219_v3 = vld [vmem:[#allocation2 + $0xa] sm:$0xff] }
  0xa3   : > { %4837 = vmatmul.mubr.msk.f32.gmra.mrb[28].mxu1 %vm436_vm2, %v6136_v20  ;;  %5062 = vmatprep.mubr.msk.f32.mxu0 %vm436_vm2, %v6041_v61 }
  0xa4   : > { %4839 = vmatprep.mubr.msk.f32.mxu1 %vm436_vm2, %v6138_v26 }
  0xa6   : > { %5063 = vmatmul.mubr.msk.f32.gmra.mrb[12].mxu0 %vm436_vm2, %v6053_v31 }
  0xa7   : > { %4840 = vmatmul.mubr.msk.f32.gmra.mrb[30].mxu1 %vm436_vm2, %v6148_v12  ;;  %5065 = vmatprep.mubr.msk.f32.mxu0 %vm436_vm2, %v6057_v28 }
  0xa8   : > { %4844 = vmatprep.mubr.msk.f32.mxu1 %vm436_vm2, %v1218_v16  ;;  %v2810_v16 = vld [vmem:[#allocation2 + $0x1a0] sm:$0xff] }
  0xaa   : > { %5066 = vmatmul.mubr.msk.f32.gmra.mrb[14].mxu0 %vm436_vm2, %v6067_v54 }
  0xab   : > { %4845 = vmatmul.mubr.msk.f32.vlgmr.msra.gmra.mrb[0].mxu1 %vm436_vm2, %v1219_v3  ;;  %5068 = vmatprep.mubr.msk.f32.mxu0 %vm436_vm2, %v6069_v59  ;;  %v2809_v3 = vld [vmem:[#allocation2 + $0x198] sm:$0xff] }
  0xac   : > { %4847 = vmatprep.mubr.msk.f32.mxu1 %vm436_vm2, %v5785_v55  ;;  %4893 = vmatpush3.msk.msra.mxu1 %vm665_vm0, %v5931_v30  ;;  %v6208_v55 = vld [vmem:[#allocation2 + $0x180] sm:$0xff]  ;;  %v6662_v30 = vld [vmem:[#allocation24_spill] sm:$0xff] }
  0xad   : > { %5192 = vmatprep.subr.msk.mxu1 %vm665_vm0, %v5590_v2 }
  0xae   : > { %5069 = vmatmul.mubr.msk.f32.gmra.mrb[16].mxu0 %vm436_vm2, %v6084_v56 }
  0xaf   : > { %4848 = vmatmul.mubr.msk.f32.gmra.mrb[2].mxu1 %vm436_vm2, %v5803_v60  ;;  %5071 = vmatprep.mubr.msk.f32.mxu0 %vm436_vm2, %v6088_v38  ;;  %v6218_v60 = vld [vmem:[#allocation2 + $0x188] sm:$0xff] }
  0xb0   : > { %4850 = vmatprep.mubr.msk.f32.mxu1 %vm436_vm2, %v5807_v62 }
  0xb2   : > { %5072 = vmatmul.mubr.msk.f32.gmra.mrb[18].mxu0 %vm436_vm2, %v6100_v63 }
  0xb3   : > { %4851 = vmatmul.mubr.msk.f32.gmra.mrb[4].mxu1 %vm436_vm2, %v5824_v1  ;;  %5074 = vmatprep.mubr.msk.f32.mxu0 %vm436_vm2, %v6102_v42 }
  0xb4   : > { %4853 = vmatprep.mubr.msk.f32.mxu1 %vm436_vm2, %v5830_v4 }
  0xb6   : > { %5075 = vmatmul.mubr.msk.f32.gmra.mrb[20].mxu0 %vm436_vm2, %v6112_v45 }
  0xb7   : > { %4854 = vmatmul.mubr.msk.f32.gmra.mrb[6].mxu1 %vm436_vm2, %v5844_v6  ;;  %5077 = vmatprep.mubr.msk.f32.mxu0 %vm436_vm2, %v6114_v11 }
  0xb8   : > { %4856 = vmatprep.mubr.msk.f32.mxu1 %vm436_vm2, %v5848_v8 }
  0xba   : > { %5078 = vmatmul.mubr.msk.f32.gmra.mrb[22].mxu0 %vm436_vm2, %v6124_v58 }
  0xbb   : > { %4857 = vmatmul.mubr.msk.f32.gmra.mrb[8].mxu1 %vm436_vm2, %v5860_v10  ;;  %5080 = vmatprep.mubr.msk.f32.mxu0 %vm436_vm2, %v6126_v47 }
  0xbc   : > { %4859 = vmatprep.mubr.msk.f32.mxu1 %vm436_vm2, %v5864_v13 }
  0xbe   : > { %5081 = vmatmul.mubr.msk.f32.gmra.mrb[24].mxu0 %vm436_vm2, %v6136_v20 }
  0xbf   : > { %4860 = vmatmul.mubr.msk.f32.gmra.mrb[10].mxu1 %vm436_vm2, %v5876_v15  ;;  %5083 = vmatprep.mubr.msk.f32.mxu0 %vm436_vm2, %v6138_v26 }
  0xc0   : > { %4862 = vmatprep.mubr.msk.f32.mxu1 %vm436_vm2, %v5880_v17 }
  0xc2   : > { %5084 = vmatmul.mubr.msk.f32.gmra.mrb[26].mxu0 %vm436_vm2, %v6148_v12 }
  0xc3   : > { %4863 = vmatmul.mubr.msk.f32.gmra.mrb[12].mxu1 %vm436_vm2, %v5892_v19  ;;  %5086 = vmatprep.mubr.msk.f32.mxu0 %vm436_vm2, %v6208_v55 }
  0xc4   : > { %4865 = vmatprep.mubr.msk.f32.mxu1 %vm436_vm2, %v5896_v21 }
  0xc6   : > { %5087 = vmatmul.mubr.msk.f32.gmra.mrb[28].mxu0 %vm436_vm2, %v6218_v60 }
  0xc7   : > { %4866 = vmatmul.mubr.msk.f32.gmra.mrb[14].mxu1 %vm436_vm2, %v5908_v23  ;;  %5089 = vmatprep.mubr.msk.f32.mxu0 %vm436_vm2, %v2809_v3  ;;  %v6664_v3 = vld [vmem:[#allocation25_spill] sm:$0xff] }
  0xc8   : > { %4868 = vmatprep.mubr.msk.f32.mxu1 %vm436_vm2, %v5910_v25 }
  0xca   : > { %5090 = vmatmul.mubr.msk.f32.gmra.mrb[30].mxu0 %vm436_vm2, %v2810_v16  ;;  %v6665_v16 = vld [vmem:[#allocation11_spill] sm:$0xff] }
  0xcb   : > { %4869 = vmatmul.mubr.msk.f32.gmra.mrb[16].mxu1 %vm436_vm2, %v5919_v27  ;;  %5094 = vmatprep.mubr.msk.f32.mxu0 %vm436_vm2, %v5673_v32  ;;  %v6648_v32 = vld [vmem:[#allocation31_spill] sm:$0xff] }
  0xcc   : > { %4871 = vmatprep.mubr.msk.f32.mxu1 %vm436_vm2, %v5923_v29 }
  0xce   : > { %5095 = vmatmul.mubr.msk.f32.vlgmr.msra.gmra.mrb[0].mxu0 %vm436_vm2, %v5691_v34  ;;  %v6649_v34 = vld [vmem:[#allocation3_spill] sm:$0xff] }
  0xcf   : > { %4872 = vmatmul.mubr.msk.f32.gmra.mrb[18].mxu1 %vm436_vm2, %v5939_v33  ;;  %5143 = vmatpush3.msk.msra.mxu0 %vm665_vm0, %v6074_v0  ;;  %v6661_v0 = vld [vmem:[#allocation9_spill] sm:$0xff] }
  0xd0   : > { %4874 = vmatprep.mubr.msk.f32.mxu1 %vm436_vm2, %v5945_v39  ;;  %5097 = vmatprep.mubr.msk.f32.mxu0 %vm436_vm2, %v5695_v35  ;;  %v6650_v35 = vld [vmem:[#allocation18_spill] sm:$0xff] }
  0xd2   : > { %5098 = vmatmul.mubr.msk.f32.gmra.mrb[2].mxu0 %vm436_vm2, %v5707_v36  ;;  %v6651_v36 = vld [vmem:[#allocation4_spill] sm:$0xff] }
  0xd3   : > { %4875 = vmatmul.mubr.msk.f32.gmra.mrb[20].mxu1 %vm436_vm2, %v5959_v40  ;;  %5100 = vmatprep.mubr.msk.f32.mxu0 %vm436_vm2, %v5709_v37  ;;  %v6652_v37 = vld [vmem:[#allocation19_spill] sm:$0xff] }
  0xd4   : > { %4877 = vmatprep.mubr.msk.f32.mxu1 %vm436_vm2, %v5963_v44 }
  0xd6   : > { %5101 = vmatmul.mubr.msk.f32.gmra.mrb[4].mxu0 %vm436_vm2, %v5723_v41  ;;  %v6653_v41 = vld [vmem:[#allocation5_spill] sm:$0xff] }
  0xd7   : > { %4878 = vmatmul.mubr.msk.f32.gmra.mrb[22].mxu1 %vm436_vm2, %v5975_v46  ;;  %5103 = vmatprep.mubr.msk.f32.mxu0 %vm436_vm2, %v5728_v43  ;;  %v6654_v43 = vld [vmem:[#allocation20_spill] sm:$0xff] }
  0xd8   : > { %4880 = vmatprep.mubr.msk.f32.mxu1 %vm436_vm2, %v5979_v57 }
  0xda   : > { %5104 = vmatmul.mubr.msk.f32.gmra.mrb[6].mxu0 %vm436_vm2, %v5746_v48  ;;  %v6655_v48 = vld [vmem:[#allocation6_spill] sm:$0xff] }
  0xdb   : > { %4881 = vmatmul.mubr.msk.f32.gmra.mrb[24].mxu1 %vm436_vm2, %v5991_v24  ;;  %5106 = vmatprep.mubr.msk.f32.mxu0 %vm436_vm2, %v5749_v49  ;;  %v6656_v49 = vld [vmem:[#allocation21_spill] sm:$0xff] }
  0xdc   : > { %4883 = vmatprep.mubr.msk.f32.mxu1 %vm436_vm2, %v5995_v22 }
  0xde   : > { %5107 = vmatmul.mubr.msk.f32.gmra.mrb[8].mxu0 %vm436_vm2, %v5759_v50  ;;  %v6657_v50 = vld [vmem:[#allocation7_spill] sm:$0xff] }
  0xdf   : > { %4884 = vmatmul.mubr.msk.f32.gmra.mrb[26].mxu1 %vm436_vm2, %v6007_v18  ;;  %5109 = vmatprep.mubr.msk.f32.mxu0 %vm436_vm2, %v5761_v51  ;;  %v6658_v51 = vld [vmem:[#allocation22_spill] sm:$0xff] }
  0xe0   : > { %4886 = vmatprep.mubr.msk.f32.mxu1 %vm436_vm2, %v6011_v14 }
  0xe2   : > { %5110 = vmatmul.mubr.msk.f32.gmra.mrb[10].mxu0 %vm436_vm2, %v5771_v52  ;;  %v6659_v52 = vld [vmem:[#allocation8_spill] sm:$0xff] }
  0xe3   : > { %4887 = vmatmul.mubr.msk.f32.gmra.mrb[28].mxu1 %vm436_vm2, %v6023_v9  ;;  %5112 = vmatprep.mubr.msk.f32.mxu0 %vm436_vm2, %v5773_v53  ;;  %v6660_v53 = vld [vmem:[#allocation23_spill] sm:$0xff] }
  0xe4   : > { %4889 = vmatprep.mubr.msk.f32.mxu1 %vm436_vm2, %v6027_v5 }
  0xe6   : > { %5113 = vmatmul.mubr.msk.f32.gmra.mrb[12].mxu0 %vm436_vm2, %v6649_v34  ;;  %v6666_v34 = vld [vmem:[#allocation26_spill] sm:$0xff] }
  0xe7   : > { %4890 = vmatmul.mubr.msk.f32.gmra.mrb[30].mxu1 %vm436_vm2, %v6648_v32  ;;  %5115 = vmatprep.mubr.msk.f32.mxu0 %vm436_vm2, %v6651_v36 }
  0xe8   : > { %4894 = vmatprep.mubr.msk.f32.mxu1 %vm436_vm2, %v6650_v35  ;;  %v6667_v35 = vld [vmem:[#allocation12_spill] sm:$0xff] }
  0xea   : > { %5116 = vmatmul.mubr.msk.f32.gmra.mrb[14].mxu0 %vm436_vm2, %v6653_v41 }
  0xeb   : > { %4895 = vmatmul.mubr.msk.f32.vlgmr.msra.gmra.mrb[0].mxu1 %vm436_vm2, %v6652_v37  ;;  %5118 = vmatprep.mubr.msk.f32.mxu0 %vm436_vm2, %v6655_v48  ;;  %v6668_v37 = vld [vmem:[#allocation27_spill] sm:$0xff] }
  0xec   : > { %4897 = vmatprep.mubr.msk.f32.mxu1 %vm436_vm2, %v6654_v43  ;;  %5193 = vmatpush3.msk.msra.mxu1 %vm665_vm0, %v5590_v2  ;;  %v6663_v2 = vld [vmem:[#allocation10_spill] sm:$0xff]  ;;  %v6669_v43 = vld [vmem:[#allocation13_spill] sm:$0xff] }
  0xee   : > { %5119 = vmatmul.mubr.msk.f32.gmra.mrb[16].mxu0 %vm436_vm2, %v6657_v50 }
  0xef   : > { %4898 = vmatmul.mubr.msk.f32.gmra.mrb[2].mxu1 %vm436_vm2, %v6656_v49  ;;  %5121 = vmatprep.mubr.msk.f32.mxu0 %vm436_vm2, %v6659_v52  ;;  %v6670_v49 = vld [vmem:[#allocation28_spill] sm:$0xff] }
  0xf0   : > { %4900 = vmatprep.mubr.msk.f32.mxu1 %vm436_vm2, %v6658_v51  ;;  %v6671_v51 = vld [vmem:[#allocation14_spill] sm:$0xff] }
  0xf2   : > { %5122 = vmatmul.mubr.msk.f32.gmra.mrb[18].mxu0 %vm436_vm2, %v6661_v0 }
  0xf3   : > { %4901 = vmatmul.mubr.msk.f32.gmra.mrb[4].mxu1 %vm436_vm2, %v6660_v53  ;;  %5124 = vmatprep.mubr.msk.f32.mxu0 %vm436_vm2, %v6663_v2  ;;  %v6672_v53 = vld [vmem:[#allocation29_spill] sm:$0xff] }
  0xf4   : > { %4903 = vmatprep.mubr.msk.f32.mxu1 %vm436_vm2, %v6662_v30  ;;  %v6673_v30 = vld [vmem:[#allocation15_spill] sm:$0xff] }
  0xf6   : > { %5125 = vmatmul.mubr.msk.f32.gmra.mrb[20].mxu0 %vm436_vm2, %v6665_v16 }
  0xf7   : > { %4904 = vmatmul.mubr.msk.f32.gmra.mrb[6].mxu1 %vm436_vm2, %v6664_v3  ;;  %5127 = vmatprep.mubr.msk.f32.mxu0 %vm436_vm2, %v6667_v35  ;;  %v6674_v3 = vld [vmem:[#allocation16_spill] sm:$0xff] }
  0xf8   : > { %4906 = vmatprep.mubr.msk.f32.mxu1 %vm436_vm2, %v6666_v34  ;;  %v6342_v34 = vld [vmem:[#allocation2 + $0x181] sm:$0xff] }
  0xfa   : > { %5128 = vmatmul.mubr.msk.f32.gmra.mrb[22].mxu0 %vm436_vm2, %v6669_v43 }
  0xfb   : > { %4907 = vmatmul.mubr.msk.f32.gmra.mrb[8].mxu1 %vm436_vm2, %v6668_v37  ;;  %5130 = vmatprep.mubr.msk.f32.mxu0 %vm436_vm2, %v6671_v51  ;;  %v6675_v37 = vld [vmem:[#allocation30_spill] sm:$0xff] }
  0xfc   : > { %4909 = vmatprep.mubr.msk.f32.mxu1 %vm436_vm2, %v6670_v49  ;;  %v6676_v49 = vld [vmem:[#allocation17_spill] sm:$0xff] }
  0xfe   : > { %5131 = vmatmul.mubr.msk.f32.gmra.mrb[24].mxu0 %vm436_vm2, %v6673_v30 }
  0xff   : > { %4910 = vmatmul.mubr.msk.f32.gmra.mrb[10].mxu1 %vm436_vm2, %v6672_v53  ;;  %5133 = vmatprep.mubr.msk.f32.mxu0 %vm436_vm2, %v6674_v3  ;;  %v6352_v53 = vld [vmem:[#allocation2 + $0x189] sm:$0xff] }
 0x100   : > { %4912 = vmatprep.mubr.msk.f32.mxu1 %vm436_vm2, %v6025_v7  ;;  %v3199_v7 = vld [vmem:[#allocation2 + $0x199] sm:$0xff] }
 0x102   : > { %5134 = vmatmul.mubr.msk.f32.gmra.mrb[26].mxu0 %vm436_vm2, %v6676_v49 }
 0x103   : > { %4913 = vmatmul.mubr.msk.f32.gmra.mrb[12].mxu1 %vm436_vm2, %v6675_v37  ;;  %5136 = vmatprep.mubr.msk.f32.mxu0 %vm436_vm2, %v6342_v34  ;;  %v3200_v37 = vld [vmem:[#allocation2 + $0x1a1] sm:$0xff] }
 0x104   : > { %4915 = vmatprep.mubr.msk.f32.mxu1 %vm436_vm2, %v6041_v61  ;;  %v3590_v61 = vld [vmem:[#allocation2 + $0x1a2] sm:$0xff] }
 0x106   : > { %5137 = vmatmul.mubr.msk.f32.gmra.mrb[28].mxu0 %vm436_vm2, %v6352_v53 }
 0x107   : > { %4916 = vmatmul.mubr.msk.f32.gmra.mrb[14].mxu1 %vm436_vm2, %v6053_v31  ;;  %5139 = vmatprep.mubr.msk.f32.mxu0 %vm436_vm2, %v3199_v7 }
 0x108   : > { %4918 = vmatprep.mubr.msk.f32.mxu1 %vm436_vm2, %v6057_v28 }
 0x10a   : > { %5140 = vmatmul.mubr.msk.f32.gmra.mrb[30].mxu0 %vm436_vm2, %v3200_v37 }
 0x10b   : > { %4919 = vmatmul.mubr.msk.f32.gmra.mrb[16].mxu1 %vm436_vm2, %v6067_v54  ;;  %5144 = vmatprep.mubr.msk.f32.mxu0 %vm436_vm2, %v5807_v62  ;;  %v6677_v54 = vld [vmem:[#allocation32_spill] sm:$0xff] }
 0x10c   : > { %4921 = vmatprep.mubr.msk.f32.mxu1 %vm436_vm2, %v6069_v59  ;;  %v6678_v59 = vld [vmem:[#allocation33_spill] sm:$0xff] }
 0x10e   : > { %5145 = vmatmul.mubr.msk.f32.vlgmr.msra.gmra.mrb[0].mxu0 %vm436_vm2, %v5824_v1 }
 0x10f   : > { %4922 = vmatmul.mubr.msk.f32.gmra.mrb[18].mxu1 %vm436_vm2, %v6084_v56  ;;  %5147 = vmatprep.mubr.msk.f32.mxu0 %vm436_vm2, %v5830_v4  ;;  %v3589_v56 = vld [vmem:[#allocation2 + $0x19a] sm:$0xff] }
 0x110   : > { %4924 = vmatprep.mubr.msk.f32.mxu1 %vm436_vm2, %v6088_v38 }
 0x112   : > { %5148 = vmatmul.mubr.msk.f32.gmra.mrb[2].mxu0 %vm436_vm2, %v5844_v6 }
 0x113   : > { %4925 = vmatmul.mubr.msk.f32.gmra.mrb[20].mxu1 %vm436_vm2, %v6100_v63  ;;  %5150 = vmatprep.mubr.msk.f32.mxu0 %vm436_vm2, %v5848_v8 }
 0x114   : > { %4927 = vmatprep.mubr.msk.f32.mxu1 %vm436_vm2, %v6102_v42 }
 0x116   : > { %5151 = vmatmul.mubr.msk.f32.gmra.mrb[4].mxu0 %vm436_vm2, %v5860_v10 }
 0x117   : > { %4928 = vmatmul.mubr.msk.f32.gmra.mrb[22].mxu1 %vm436_vm2, %v6112_v45  ;;  %5153 = vmatprep.mubr.msk.f32.mxu0 %vm436_vm2, %v5864_v13 }
 0x118   : > { %4930 = vmatprep.mubr.msk.f32.mxu1 %vm436_vm2, %v6114_v11 }
 0x11a   : > { %5154 = vmatmul.mubr.msk.f32.gmra.mrb[6].mxu0 %vm436_vm2, %v5876_v15 }
 0x11b   : > { %4931 = vmatmul.mubr.msk.f32.gmra.mrb[24].mxu1 %vm436_vm2, %v6124_v58  ;;  %5156 = vmatprep.mubr.msk.f32.mxu0 %vm436_vm2, %v5880_v17 }
 0x11c   : > { %4933 = vmatprep.mubr.msk.f32.mxu1 %vm436_vm2, %v6126_v47 }
 0x11e   : > { %5157 = vmatmul.mubr.msk.f32.gmra.mrb[8].mxu0 %vm436_vm2, %v5892_v19 }
 0x11f   : > { %4934 = vmatmul.mubr.msk.f32.gmra.mrb[26].mxu1 %vm436_vm2, %v6136_v20  ;;  %5159 = vmatprep.mubr.msk.f32.mxu0 %vm436_vm2, %v5896_v21 }
 0x120   : > { %4936 = vmatprep.mubr.msk.f32.mxu1 %vm436_vm2, %v6138_v26 }
 0x122   : > { %5160 = vmatmul.mubr.msk.f32.gmra.mrb[10].mxu0 %vm436_vm2, %v5908_v23 }
 0x123   : > { %4937 = vmatmul.mubr.msk.f32.gmra.mrb[28].mxu1 %vm436_vm2, %v6148_v12  ;;  %5162 = vmatprep.mubr.msk.f32.mxu0 %vm436_vm2, %v5910_v25 }
 0x124   : > { %4939 = vmatprep.mubr.msk.f32.mxu1 %vm436_vm2, %v6208_v55 }
 0x126   : > { %5163 = vmatmul.mubr.msk.f32.gmra.mrb[12].mxu0 %vm436_vm2, %v5919_v27 }
 0x127   : > { %4940 = vmatmul.mubr.msk.f32.gmra.mrb[30].mxu1 %vm436_vm2, %v6218_v60  ;;  %5165 = vmatprep.mubr.msk.f32.mxu0 %vm436_vm2, %v5923_v29 }
 0x128   : > { %4968 = vmatprep.mubr.msk.f32.mxu1 %vm436_vm2, %v6651_v36 }
 0x12a   : > { %5166 = vmatmul.mubr.msk.f32.gmra.mrb[14].mxu0 %vm436_vm2, %v5939_v33 }
 0x12b   : > { %4969 = vmatmul.mubr.msk.f32.vlgmr.msra.gmra.mrb[16].mxu1 %vm436_vm2, %v6653_v41  ;;  %5168 = vmatprep.mubr.msk.f32.mxu0 %vm436_vm2, %v5945_v39 }
 0x12c   : > { %4971 = vmatprep.mubr.msk.f32.mxu1 %vm436_vm2, %v6655_v48 }
 0x12e   : > { %5169 = vmatmul.mubr.msk.f32.gmra.mrb[16].mxu0 %vm436_vm2, %v5959_v40 }
 0x12f   : > { %4972 = vmatmul.mubr.msk.f32.gmra.mrb[18].mxu1 %vm436_vm2, %v6657_v50  ;;  %5171 = vmatprep.mubr.msk.f32.mxu0 %vm436_vm2, %v5963_v44 }
 0x130   : > { %4974 = vmatprep.mubr.msk.f32.mxu1 %vm436_vm2, %v6659_v52 }
 0x132   : > { %5172 = vmatmul.mubr.msk.f32.gmra.mrb[18].mxu0 %vm436_vm2, %v5975_v46 }
 0x133   : > { %4975 = vmatmul.mubr.msk.f32.gmra.mrb[20].mxu1 %vm436_vm2, %v6661_v0  ;;  %5174 = vmatprep.mubr.msk.f32.mxu0 %vm436_vm2, %v5979_v57 }
 0x134   : > { %4977 = vmatprep.mubr.msk.f32.mxu1 %vm436_vm2, %v6663_v2 }
 0x136   : > { %5175 = vmatmul.mubr.msk.f32.gmra.mrb[20].mxu0 %vm436_vm2, %v5991_v24 }
 0x137   : > { %4978 = vmatmul.mubr.msk.f32.gmra.mrb[22].mxu1 %vm436_vm2, %v6665_v16  ;;  %5177 = vmatprep.mubr.msk.f32.mxu0 %vm436_vm2, %v5995_v22 }
 0x138   : > { %4980 = vmatprep.mubr.msk.f32.mxu1 %vm436_vm2, %v6667_v35 }
 0x13a   : > { %5178 = vmatmul.mubr.msk.f32.gmra.mrb[22].mxu0 %vm436_vm2, %v6007_v18 }
 0x13b   : > { %4981 = vmatmul.mubr.msk.f32.gmra.mrb[24].mxu1 %vm436_vm2, %v6669_v43  ;;  %5180 = vmatprep.mubr.msk.f32.mxu0 %vm436_vm2, %v6011_v14 }
 0x13c   : > { %4983 = vmatprep.mubr.msk.f32.mxu1 %vm436_vm2, %v6671_v51 }
 0x13e   : > { %5181 = vmatmul.mubr.msk.f32.gmra.mrb[24].mxu0 %vm436_vm2, %v6023_v9 }
 0x13f   : > { %4984 = vmatmul.mubr.msk.f32.gmra.mrb[26].mxu1 %vm436_vm2, %v6673_v30  ;;  %5183 = vmatprep.mubr.msk.f32.mxu0 %vm436_vm2, %v6027_v5 }
 0x140   : > { %4986 = vmatprep.mubr.msk.f32.mxu1 %vm436_vm2, %v6674_v3 }
 0x142   : > { %5184 = vmatmul.mubr.msk.f32.gmra.mrb[26].mxu0 %vm436_vm2, %v6648_v32 }
 0x143   : > { %4987 = vmatmul.mubr.msk.f32.gmra.mrb[28].mxu1 %vm436_vm2, %v6676_v49  ;;  %5186 = vmatprep.mubr.msk.f32.mxu0 %vm436_vm2, %v6677_v54 }
 0x144   : > { %4989 = vmatprep.mubr.msk.f32.mxu1 %vm436_vm2, %v6342_v34 }
 0x146   : > { %5187 = vmatmul.mubr.msk.f32.gmra.mrb[28].mxu0 %vm436_vm2, %v6678_v59 }
 0x147   : > { %4990 = vmatmul.mubr.msk.f32.gmra.mrb[30].mxu1 %vm436_vm2, %v6352_v53  ;;  %5189 = vmatprep.mubr.msk.f32.mxu0 %vm436_vm2, %v3589_v56 }
 0x14a   : > { %5190 = vmatmul.mubr.msk.f32.gmra.mrb[30].mxu0 %vm436_vm2, %v3590_v61 }
 0x1be   : > { %v4896_v62 = vpop.f32.mrb[0].mxu1 }
 0x1bf   : > { %v1807_v1 = vpop.f32.mrb[1].mxu1 }
 0x1c2   : > { %v4899_v4 = vpop.f32.mrb[2].mxu1 }
 0x1c3   : > { %v1817_v5 = vpop.f32.mrb[3].mxu1 }
 0x1c6   : > { %v4902_v6 = vpop.f32.mrb[4].mxu1 }
 0x1c7   : > { %v1827_v8 = vpop.f32.mrb[5].mxu1 }
 0x1ca   : > { %v4905_v9 = vpop.f32.mrb[6].mxu1 }
 0x1cb   : > { %v1837_v10 = vpop.f32.mrb[7].mxu1 }
 0x1ce   : > { %v4908_v12 = vpop.f32.mrb[8].mxu1 }
 0x1cf   : > { %v1847_v13 = vpop.f32.mrb[9].mxu1 }
 0x1d2   : > { %v4911_v14 = vpop.f32.mrb[10].mxu1 }
 0x1d3   : > { %v1857_v15 = vpop.f32.mrb[11].mxu1 }
 0x1d6   : > { %v4914_v17 = vpop.f32.mrb[12].mxu1 }
 0x1d7   : > { %v1867_v18 = vpop.f32.mrb[13].mxu1 }
 0x1da   : > { %v4917_v19 = vpop.f32.mrb[14].mxu1 }
 0x1db   : > { %v1877_v20 = vpop.f32.mrb[15].mxu1 }
 0x1e1   : > { %v5146_v21 = vpop.f32.mrb[0].mxu0 }
 0x1e2   : > { %v5194_v22 = vadd.f32 %v5146_v21, %v4896_v62  ;;  %v3758_v23 = vpop.f32.mrb[1].mxu0 }
 0x1e3   : > { %v5195_v25 = vadd.f32 %v3758_v23, %v1807_v1 }
 0x1e4   : > { %3951 = vst.msk [vmem:[%s6491_s2 + $0x8] sm:$0xff] %vm3949_vm4, %v5194_v22 }
 0x1e5   : > { %3950 = vst.msk [vmem:[%s6491_s2] sm:$0xff] %vm3949_vm4, %v5195_v25  ;;  %v5149_v27 = vpop.f32.mrb[2].mxu0 }
 0x1e6   : > { %v5196_v28 = vadd.f32 %v5149_v27, %v4899_v4  ;;  %v3768_v29 = vpop.f32.mrb[3].mxu0 }
 0x1e7   : > { %v5197_v31 = vadd.f32 %v3768_v29, %v1817_v5 }
 0x1e8   : > { %3953 = vst.msk [vmem:[%s6491_s2 + $0x18] sm:$0xff] %vm3949_vm4, %v5196_v28 }
 0x1e9   : > { %3952 = vst.msk [vmem:[%s6491_s2 + $0x10] sm:$0xff] %vm3949_vm4, %v5197_v31  ;;  %v5152_v33 = vpop.f32.mrb[4].mxu0 }
 0x1ea   : > { %v5198_v38 = vadd.f32 %v5152_v33, %v4902_v6  ;;  %v3778_v39 = vpop.f32.mrb[5].mxu0 }
 0x1eb   : > { %v5199_v11 = vadd.f32 %v3778_v39, %v1827_v8 }
 0x1ec   : > { %3955 = vst.msk [vmem:[%s6491_s2 + $0x28] sm:$0xff] %vm3949_vm4, %v5198_v38 }
 0x1ed   : > { %3954 = vst.msk [vmem:[%s6491_s2 + $0x20] sm:$0xff] %vm3949_vm4, %v5199_v11  ;;  %v5155_v40 = vpop.f32.mrb[6].mxu0 }
 0x1ee   : > { %v5200_v42 = vadd.f32 %v5155_v40, %v4905_v9  ;;  %v3788_v44 = vpop.f32.mrb[7].mxu0 }
 0x1ef   : > { %v5201_v45 = vadd.f32 %v3788_v44, %v1837_v10 }
 0x1f0   : > { %3957 = vst.msk [vmem:[%s6491_s2 + $0x38] sm:$0xff] %vm3949_vm4, %v5200_v42 }
 0x1f1   : > { %3956 = vst.msk [vmem:[%s6491_s2 + $0x30] sm:$0xff] %vm3949_vm4, %v5201_v45  ;;  %v5158_v46 = vpop.f32.mrb[8].mxu0 }
 0x1f2   : > { %v5202_v47 = vadd.f32 %v5158_v46, %v4908_v12  ;;  %v3798_v57 = vpop.f32.mrb[9].mxu0 }
 0x1f3   : > { %v5203_v58 = vadd.f32 %v3798_v57, %v1847_v13 }
 0x1f4   : > { %3959 = vst.msk [vmem:[%s6491_s2 + $0x48] sm:$0xff] %vm3949_vm4, %v5202_v47 }
 0x1f5   : > { %3958 = vst.msk [vmem:[%s6491_s2 + $0x40] sm:$0xff] %vm3949_vm4, %v5203_v58  ;;  %v5161_v24 = vpop.f32.mrb[10].mxu0 }
 0x1f6   : > { %v5204_v26 = vadd.f32 %v5161_v24, %v4911_v14  ;;  %v3808_v63 = vpop.f32.mrb[11].mxu0 }
 0x1f7   : > { %v5205_v55 = vadd.f32 %v3808_v63, %v1857_v15 }
 0x1f8   : > { %3961 = vst.msk [vmem:[%s6491_s2 + $0x58] sm:$0xff] %vm3949_vm4, %v5204_v26 }
 0x1f9   : > { %3960 = vst.msk [vmem:[%s6491_s2 + $0x50] sm:$0xff] %vm3949_vm4, %v5205_v55  ;;  %v5164_v60 = vpop.f32.mrb[12].mxu0 }
 0x1fa   : > { %v5206_v32 = vadd.f32 %v5164_v60, %v4914_v17  ;;  %v3818_v36 = vpop.f32.mrb[13].mxu0 }
 0x1fb   : > { %v5207_v41 = vadd.f32 %v3818_v36, %v1867_v18 }
 0x1fc   : > { %3963 = vst.msk [vmem:[%s6491_s2 + $0x68] sm:$0xff] %vm3949_vm4, %v5206_v32 }
 0x1fd   : > { %3962 = vst.msk [vmem:[%s6491_s2 + $0x60] sm:$0xff] %vm3949_vm4, %v5207_v41  ;;  %v5167_v50 = vpop.f32.mrb[14].mxu0 }
 0x1fe   : > { %v4970_v48 = vpop.f32.mrb[16].mxu1  ;;  %v5208_v52 = vadd.f32 %v5167_v50, %v4917_v19  ;;  %v3828_v2 = vpop.f32.mrb[15].mxu0 }
 0x1ff   : > { %v2277_v0 = vpop.f32.mrb[17].mxu1  ;;  %v5209_v16 = vadd.f32 %v3828_v2, %v1877_v20 }
 0x200   : > { %3965 = vst.msk [vmem:[%s6491_s2 + $0x78] sm:$0xff] %vm3949_vm4, %v5208_v52 }
 0x201   : > { %3964 = vst.msk [vmem:[%s6491_s2 + $0x70] sm:$0xff] %vm3949_vm4, %v5209_v16  ;;  %v5170_v43 = vpop.f32.mrb[16].mxu0 }
 0x202   : > { %v4973_v35 = vpop.f32.mrb[18].mxu1  ;;  %v5210_v51 = vadd.f32 %v5170_v43, %v4970_v48  ;;  %v3838_v3 = vpop.f32.mrb[17].mxu0 }
 0x203   : > { %v2287_v30 = vpop.f32.mrb[19].mxu1  ;;  %v5211_v34 = vadd.f32 %v3838_v3, %v2277_v0 }
 0x204   : > { %3967 = vst.msk [vmem:[%s6491_s2 + $0x88] sm:$0xff] %vm3949_vm4, %v5210_v51 }
 0x205   : > { %3966 = vst.msk [vmem:[%s6491_s2 + $0x80] sm:$0xff] %vm3949_vm4, %v5211_v34  ;;  %v5173_v53 = vpop.f32.mrb[18].mxu0 }
 0x206   : > { %v4976_v49 = vpop.f32.mrb[20].mxu1  ;;  %v5212_v7 = vadd.f32 %v5173_v53, %v4973_v35  ;;  %v3848_v54 = vpop.f32.mrb[19].mxu0 }
 0x207   : > { %v2297_v37 = vpop.f32.mrb[21].mxu1  ;;  %v5213_v56 = vadd.f32 %v3848_v54, %v2287_v30 }
 0x208   : > { %3969 = vst.msk [vmem:[%s6491_s2 + $0x98] sm:$0xff] %vm3949_vm4, %v5212_v7 }
 0x209   : > { %3968 = vst.msk [vmem:[%s6491_s2 + $0x90] sm:$0xff] %vm3949_vm4, %v5213_v56  ;;  %v5176_v61 = vpop.f32.mrb[20].mxu0 }
 0x20a   : > { %v4979_v59 = vpop.f32.mrb[22].mxu1  ;;  %v5214_v62 = vadd.f32 %v5176_v61, %v4976_v49  ;;  %v3858_v4 = vpop.f32.mrb[21].mxu0 }
 0x20b   : > { %v2307_v1 = vpop.f32.mrb[23].mxu1  ;;  %v5215_v5 = vadd.f32 %v3858_v4, %v2297_v37 }
 0x20c   : > { %3971 = vst.msk [vmem:[%s6491_s2 + $0xa8] sm:$0xff] %vm3949_vm4, %v5214_v62 }
 0x20d   : > { %3970 = vst.msk [vmem:[%s6491_s2 + $0xa0] sm:$0xff] %vm3949_vm4, %v5215_v5  ;;  %v5179_v8 = vpop.f32.mrb[22].mxu0 }
 0x20e   : > { %v4982_v6 = vpop.f32.mrb[24].mxu1  ;;  %v5216_v9 = vadd.f32 %v5179_v8, %v4979_v59  ;;  %v3868_v12 = vpop.f32.mrb[23].mxu0 }
 0x20f   : > { %v2317_v10 = vpop.f32.mrb[25].mxu1  ;;  %v5217_v13 = vadd.f32 %v3868_v12, %v2307_v1 }
 0x210   : > { %3973 = vst.msk [vmem:[%s6491_s2 + $0xb8] sm:$0xff] %vm3949_vm4, %v5216_v9 }
 0x211   : > { %3972 = vst.msk [vmem:[%s6491_s2 + $0xb0] sm:$0xff] %vm3949_vm4, %v5217_v13  ;;  %v5182_v15 = vpop.f32.mrb[24].mxu0 }
 0x212   : > { %v4985_v14 = vpop.f32.mrb[26].mxu1  ;;  %v5218_v17 = vadd.f32 %v5182_v15, %v4982_v6  ;;  %v3878_v19 = vpop.f32.mrb[25].mxu0 }
 0x213   : > { %v2327_v18 = vpop.f32.mrb[27].mxu1  ;;  %v5219_v20 = vadd.f32 %v3878_v19, %v2317_v10 }
 0x214   : > { %3975 = vst.msk [vmem:[%s6491_s2 + $0xc8] sm:$0xff] %vm3949_vm4, %v5218_v17 }
 0x215   : > { %3974 = vst.msk [vmem:[%s6491_s2 + $0xc0] sm:$0xff] %vm3949_vm4, %v5219_v20  ;;  %v5185_v22 = vpop.f32.mrb[26].mxu0 }
 0x216   : > { %v4988_v21 = vpop.f32.mrb[28].mxu1  ;;  %v5220_v23 = vadd.f32 %v5185_v22, %v4985_v14  ;;  %v3888_v27 = vpop.f32.mrb[27].mxu0 }
 0x217   : > { %v2337_v25 = vpop.f32.mrb[29].mxu1  ;;  %v5221_v28 = vadd.f32 %v3888_v27, %v2327_v18 }
 0x218   : > { %3977 = vst.msk [vmem:[%s6491_s2 + $0xd8] sm:$0xff] %vm3949_vm4, %v5220_v23 }
 0x219   : > { %3976 = vst.msk [vmem:[%s6491_s2 + $0xd0] sm:$0xff] %vm3949_vm4, %v5221_v28  ;;  %v5188_v31 = vpop.f32.mrb[28].mxu0 }
 0x21a   : > { %v4991_v29 = vpop.f32.mrb[30].mxu1  ;;  %v5222_v33 = vadd.f32 %v5188_v31, %v4988_v21  ;;  %v3898_v39 = vpop.f32.mrb[29].mxu0 }
 0x21b   : > { %v2347_v38 = vpop.f32.mrb[31].mxu1  ;;  %v5223_v11 = vadd.f32 %v3898_v39, %v2337_v25 }
 0x21c   : > { %3979 = vst.msk [vmem:[%s6491_s2 + $0xe8] sm:$0xff] %vm3949_vm4, %v5222_v33 }
 0x21d   : > { %3978 = vst.msk [vmem:[%s6491_s2 + $0xe0] sm:$0xff] %vm3949_vm4, %v5223_v11  ;;  %v5191_v40 = vpop.f32.mrb[30].mxu0 }
 0x21e   : > { %v5224_v42 = vadd.f32 %v5191_v40, %v4991_v29  ;;  %v3908_v44 = vpop.f32.mrb[31].mxu0 }
 0x21f   : > { %v5225_v45 = vadd.f32 %v3908_v44, %v2347_v38 }
 0x220   : > { %3981 = vst.msk [vmem:[%s6491_s2 + $0xf8] sm:$0xff] %vm3949_vm4, %v5224_v42 }
 0x221   : > { %3980 = vst.msk [vmem:[%s6491_s2 + $0xf0] sm:$0xff] %vm3949_vm4, %v5225_v45 }
 0x222 PF: > { %s14_s17 = sadd.s32 1, %s5497_s17   ;;  %s6679_s15 = smov %s5493_s16 }
 0x223   : > { %p11_p5 = scmp.ge.s32.totalorder %s14_s17, 4   ;;  %s6680_s16 = smov %s6682_s0 }
 0x225   :  { %13 = sbr.rel (!%p11_p5) target bundleno = 2 (0x2), region = 100 }

</bundles_post_ra>
